<compile_context>
chip_gen: v6e
topology: v6e:2x2x1
jax: 0.10.0
libtpu: 0.0.40
codegen_flags: <defaults>
</compile_context>

<pallas_src>
import functools

import numpy as np
import jax
import jax.numpy as jnp
from jax.experimental import pallas as pl
from jax.experimental.pallas import tpu as pltpu


# -----------------------------------------------------------------------------------
# Model config (small, consistent with the reference module)
# -----------------------------------------------------------------------------------
INPUT_SHAPE = (4, 16, 16)                       # (C, H, W)
N_ACTIONS = 6
CONV_LAYERS = (
    dict(in_c=4, out_c=8, k=4, s=2),            # 16x16 -> 7x7
    dict(in_c=8, out_c=16, k=3, s=1),           # 7x7   -> 5x5
)
FC_LAYER = POLICY_LAYER = VALUE_LAYER = 32      # module wiring requires these equal
BATCH = 2
HEAD_LANES = 128                                # lane-padded merged head width


def derive_dims(input_shape, conv_layers, n_actions, fc_layer):
    """Static geometry (all Python ints)."""
    Cin, H, W = input_shape
    c1, c2 = conv_layers
    k1, s1, C1 = c1["k"], c1["s"], c1["out_c"]
    k2, s2, C2 = c2["k"], c2["s"], c2["out_c"]
    assert c1["in_c"] == Cin and c2["in_c"] == C1
    H1 = (H - k1) // s1 + 1
    W1 = (W - k1) // s1 + 1
    H2 = (H1 - k2) // s2 + 1
    W2 = (W1 - k2) // s2 + 1
    d_in = H * W * Cin                   # 1024
    d1 = H1 * W1 * C1                    # 392
    d2 = H2 * W2 * C2                    # 400
    return dict(H=H, W=W, Cin=Cin, k1=k1, s1=s1, C1=C1, k2=k2, s2=s2, C2=C2,
                H1=H1, W1=W1, H2=H2, W2=W2,
                d_in=d_in, d1=d1, d2=d2, conv_out=d2, fc=fc_layer, A=n_actions)


# -----------------------------------------------------------------------------------
# Fused Pallas kernel: one batch tile per grid step, whole network VMEM-resident,
# four lane-dense MXU matmuls, no in-kernel relayouts.
# -----------------------------------------------------------------------------------
def _fused_mlp_kernel(x_ref, w1_ref, b1_ref, w2_ref, b2_ref,
                      wfc_ref, bfc_ref, wh_ref, bh_ref, out_ref):
    f32, bf16 = jnp.float32, jnp.bfloat16
    # conv1 (folded to a dense (d_in, d1) matrix) + bias + ReLU
    a1 = jnp.dot(x_ref[...], w1_ref[...], preferred_element_type=f32)
    a1 = jnp.maximum(a1 + b1_ref[...], 0.0).astype(bf16)           # (Bt, d1)
    # conv2 (folded to a dense (d1, d2) matrix) + bias + ReLU
    a2 = jnp.dot(a1, w2_ref[...], preferred_element_type=f32)
    a2 = jnp.maximum(a2 + b2_ref[...], 0.0).astype(bf16)           # (Bt, d2)
    # fc + ReLU (weight rows pre-permuted to consume the (h, w, c) lane order)
    h = jnp.dot(a2, wfc_ref[...], preferred_element_type=f32)
    h = jnp.maximum(h + bfc_ref[...], 0.0).astype(bf16)            # (Bt, fc)
    # merged, lane-padded policy/value head -> one unmasked (Bt, 128) store
    out_ref[...] = jnp.dot(h, wh_ref[...], preferred_element_type=f32) + bh_ref[...]


def _const_spec(shape):
    n = len(shape)
    return pl.BlockSpec(tuple(shape), lambda b, _n=n: (0,) * _n)


def a2c_forward(x_nchw, kp, d, b_tile=None):
    """Matches A2CModel.forward: returns (policy_logits, value)."""
    N = x_nchw.shape[0]
    A, d_in = d["A"], d["d_in"]

    # Wrapper-side layout plumbing (fused by XLA into the same jit):
    # NCHW -> NHWC -> (N, H*W*Cin) flat in (h, w, c) order, pre-cast to bf16.
    x = jnp.transpose(x_nchw.astype(jnp.float32), (0, 2, 3, 1))
    x = x.reshape(N, d_in).astype(jnp.bfloat16)

    # Batch tiling.  Bt=16 for big batches keeps native bf16 (16,128) tiling and
    # multiple grid steps per TensorCore; tiny batches run as a single step.
    if b_tile is None:
        b_tile = N if N <= 16 else 16
    n_pad = (-N) % b_tile
    if n_pad:
        x = jnp.concatenate([x, jnp.zeros((n_pad, d_in), x.dtype)], axis=0)
    n_tot = N + n_pad
    grid = (n_tot // b_tile,)

    flops_per_img = 2 * (d["d_in"] * d["d1"] + d["d1"] * d["d2"]
                         + d["d2"] * d["fc"] + d["fc"] * HEAD_LANES)
    weight_bytes = sum(int(np.prod(kp[k].shape)) * kp[k].dtype.itemsize for k in kp)
    cost = pl.CostEstimate(
        flops=flops_per_img * n_tot,
        transcendentals=0,
        bytes_accessed=n_tot * d_in * 2 + weight_bytes + n_tot * HEAD_LANES * 4)

    out = pl.pallas_call(
        _fused_mlp_kernel,
        grid=grid,
        out_shape=jax.ShapeDtypeStruct((n_tot, HEAD_LANES), jnp.float32),
        in_specs=[
            pl.BlockSpec((b_tile, d_in), lambda b: (b, 0)),
            _const_spec(kp["w1"].shape), _const_spec(kp["b1"].shape),
            _const_spec(kp["w2"].shape), _const_spec(kp["b2"].shape),
            _const_spec(kp["wfc"].shape), _const_spec(kp["bfc"].shape),
            _const_spec(kp["wh"].shape), _const_spec(kp["bh"].shape),
        ],
        out_specs=pl.BlockSpec((b_tile, HEAD_LANES), lambda b: (b, 0)),
        compiler_params=pltpu.CompilerParams(
            dimension_semantics=("parallel",)),   # 2 TCs on v7x; harmless elsewhere
        cost_estimate=cost,
    )(x, kp["w1"], kp["b1"], kp["w2"], kp["b2"],
      kp["wfc"], kp["bfc"], kp["wh"], kp["bh"])

    heads = out[:N]
    return heads[:, :A], heads[:, A:A + 1]


# -----------------------------------------------------------------------------------
# Parameters: generate in PyTorch-native layouts, then repack offline for the kernel
# -----------------------------------------------------------------------------------
def init_torch_like_params(key, d):
    scale = 0.05
    ks = iter(jax.random.split(key, 12))
    n = lambda shape: scale * jax.random.normal(next(ks), shape, jnp.float32)
    return dict(
        c1_w=n((d["C1"], d["Cin"], d["k1"], d["k1"])),   # Conv2d: (Cout, Cin, KH, KW)
        c1_b=n((d["C1"],)),
        c2_w=n((d["C2"], d["C1"], d["k2"], d["k2"])),
        c2_b=n((d["C2"],)),
        fc_w=n((d["fc"], d["conv_out"])),                # Linear: (out, in); in = NCHW flat
        fc_b=n((d["fc"],)),
        pol_w=n((d["A"], d["fc"])), pol_b=n((d["A"],)),
        val_w=n((1, d["fc"])), val_b=n((1,)),
    )


def _conv_as_dense(conv_w_oihw, stride, in_hwc_shape):
    """Dense (H*W*Cin, Ho*Wo*Cout) matrix of a VALID conv, both sides flattened in
    (h, w, c) order.  Built by probing the (linear) conv with a one-hot basis so
    the index bookkeeping stays inside lax.conv; each entry is exactly one conv
    weight value (or 0), so the later bf16 cast matches per-weight bf16 rounding."""
    H, W, Cin = in_hwc_shape
    basis = jnp.eye(H * W * Cin, dtype=jnp.float32).reshape(H * W * Cin, H, W, Cin)
    w_hwio = jnp.transpose(conv_w_oihw, (2, 3, 1, 0))
    out = jax.lax.conv_general_dilated(
        basis, w_hwio, (stride, stride), "VALID",
        dimension_numbers=("NHWC", "HWIO", "NHWC"))
    return out.reshape(H * W * Cin, -1)


def pack_params_for_kernel(p, d):
    """Offline repacking: fold im2col / stride / NCHW-flatten into dense per-layer
    matrices and bf16-cast everything, so the kernel body is pure matmul+bias+ReLU."""
    bf = lambda a: a.astype(jnp.bfloat16)
    H, W, Cin = d["H"], d["W"], d["Cin"]
    H1, W1, C1 = d["H1"], d["W1"], d["C1"]
    H2, W2, C2 = d["H2"], d["W2"], d["C2"]
    A = d["A"]

    w1d = _conv_as_dense(p["c1_w"], d["s1"], (H, W, Cin))      # (d_in, d1)
    w2d = _conv_as_dense(p["c2_w"], d["s2"], (H1, W1, C1))     # (d1, d2)
    b1d = jnp.tile(p["c1_b"], H1 * W1)[None, :]                # (1, d1), (h, w, c) order
    b2d = jnp.tile(p["c2_b"], H2 * W2)[None, :]                # (1, d2)

    # fold PyTorch's NCHW flatten into a row permutation of the fc weight so it
    # consumes the conv2 output directly in (h, w, c) lane order.
    hh, ww, cc = np.meshgrid(np.arange(H2), np.arange(W2), np.arange(C2), indexing="ij")
    perm = (cc * (H2 * W2) + hh * W2 + ww).reshape(-1)
    wfc = jnp.transpose(p["fc_w"], (1, 0))[perm]               # (d2, fc)

    # merged policy/value head, zero-padded to 128 lanes: cols [0:A)=policy, [A]=value.
    wh = jnp.concatenate([jnp.transpose(p["pol_w"]), jnp.transpose(p["val_w"])], axis=1)
    wh = jnp.pad(wh, ((0, 0), (0, HEAD_LANES - (A + 1))))
    bh = jnp.concatenate([p["pol_b"], p["val_b"]])[None, :]
    bh = jnp.pad(bh, ((0, 0), (0, HEAD_LANES - (A + 1))))

    return dict(w1=bf(w1d), b1=b1d, w2=bf(w2d), b2=b2d,
                wfc=bf(wfc), bfc=p["fc_b"][None, :], wh=bf(wh), bh=bh)


# -----------------------------------------------------------------------------------
# Plain-JAX reference (mirrors the PyTorch forward with the same bf16 operand rounding)
# -----------------------------------------------------------------------------------
def a2c_reference(x_nchw, p, d):
    f32, bf16 = jnp.float32, jnp.bfloat16
    x = jnp.transpose(x_nchw.astype(f32), (0, 2, 3, 1))
    w1 = jnp.transpose(p["c1_w"], (2, 3, 1, 0)).astype(bf16)   # HWIO
    w2 = jnp.transpose(p["c2_w"], (2, 3, 1, 0)).astype(bf16)
    dn = ("NHWC", "HWIO", "NHWC")
    a1 = jax.lax.conv_general_dilated(x.astype(bf16), w1, (d["s1"],) * 2, "VALID",
                                      dimension_numbers=dn, preferred_element_type=f32)
    a1 = jnp.maximum(a1 + p["c1_b"], 0.0)
    a2 = jax.lax.conv_general_dilated(a1.astype(bf16), w2, (d["s2"],) * 2, "VALID",
                                      dimension_numbers=dn, preferred_element_type=f32)
    a2 = jnp.maximum(a2 + p["c2_b"], 0.0)
    flat = jnp.transpose(a2, (0, 3, 1, 2)).reshape(x.shape[0], -1)   # NCHW flatten
    h = jnp.maximum(jnp.dot(flat.astype(bf16), jnp.transpose(p["fc_w"]).astype(bf16),
                            preferred_element_type=f32) + p["fc_b"], 0.0)
    pol = jnp.dot(h.astype(bf16), jnp.transpose(p["pol_w"]).astype(bf16),
                  preferred_element_type=f32) + p["pol_b"]
    val = jnp.dot(h.astype(bf16), jnp.transpose(p["val_w"]).astype(bf16),
                  preferred_element_type=f32) + p["val_b"]
    return pol, val


# -----------------------------------------------------------------------------------
if __name__ == "__main__":
    dims = derive_dims(INPUT_SHAPE, CONV_LAYERS, N_ACTIONS, FC_LAYER)

    key = jax.random.PRNGKey(0)
    pkey, xkey = jax.random.split(key)
    torch_params = init_torch_like_params(pkey, dims)
    kparams = pack_params_for_kernel(torch_params, dims)

    x = jax.random.normal(xkey, (BATCH, *INPUT_SHAPE), jnp.float32)   # NCHW input

    fwd = jax.jit(functools.partial(a2c_forward, kp=kparams, d=dims))
    policy, value = fwd(x)
    jax.block_until_ready((policy, value))

    assert policy.shape == (BATCH, N_ACTIONS) and policy.dtype == jnp.float32
    assert value.shape == (BATCH, 1) and value.dtype == jnp.float32

    # numerics check against a plain-JAX mirror of the PyTorch forward
    pol_ref, val_ref = jax.jit(
        functools.partial(a2c_reference, p=torch_params, d=dims))(x)
    np.testing.assert_allclose(np.asarray(policy), np.asarray(pol_ref),
                               atol=2e-3, rtol=2e-2)
    np.testing.assert_allclose(np.asarray(value), np.asarray(val_ref),
                               atol=2e-3, rtol=2e-2)

    print("KERNEL_OK")
</pallas_src>

<mosaic_0001>
module attributes {stable_mosaic.version = 11 : i64} {
  func.func @_fused_mlp_kernel(%arg0: i32, %arg1: memref<2x1024xbf16, #tpu.memory_space<vmem>>, %arg2: memref<1024x392xbf16, #tpu.memory_space<vmem>>, %arg3: memref<1x392xf32, #tpu.memory_space<vmem>>, %arg4: memref<392x400xbf16, #tpu.memory_space<vmem>>, %arg5: memref<1x400xf32, #tpu.memory_space<vmem>>, %arg6: memref<400x32xbf16, #tpu.memory_space<vmem>>, %arg7: memref<1x32xf32, #tpu.memory_space<vmem>>, %arg8: memref<32x128xbf16, #tpu.memory_space<vmem>>, %arg9: memref<1x128xf32, #tpu.memory_space<vmem>>, %arg10: memref<2x128xf32, #tpu.memory_space<vmem>>) attributes {dimension_semantics = [#tpu.dimension_semantics<parallel>], iteration_bounds = array<i64: 1>, scalar_prefetch = 0 : i64, scratch_operands = 0 : i64, tpu.core_type = #tpu.core_type<tc>, window_params = [{transform_indices = @transform_0, window_bounds = array<i64: 2, 1024>}, {pipeline_mode = #tpu.pipeline_mode<synchronous>, transform_indices = @transform_1, window_bounds = array<i64: 1024, 392>}, {pipeline_mode = #tpu.pipeline_mode<synchronous>, transform_indices = @transform_2, window_bounds = array<i64: 1, 392>}, {pipeline_mode = #tpu.pipeline_mode<synchronous>, transform_indices = @transform_3, window_bounds = array<i64: 392, 400>}, {pipeline_mode = #tpu.pipeline_mode<synchronous>, transform_indices = @transform_4, window_bounds = array<i64: 1, 400>}, {pipeline_mode = #tpu.pipeline_mode<synchronous>, transform_indices = @transform_5, window_bounds = array<i64: 400, 32>}, {pipeline_mode = #tpu.pipeline_mode<synchronous>, transform_indices = @transform_6, window_bounds = array<i64: 1, 32>}, {pipeline_mode = #tpu.pipeline_mode<synchronous>, transform_indices = @transform_7, window_bounds = array<i64: 32, 128>}, {pipeline_mode = #tpu.pipeline_mode<synchronous>, transform_indices = @transform_8, window_bounds = array<i64: 1, 128>}, {transform_indices = @transform_9, window_bounds = array<i64: 2, 128>}]} {
    %c0 = arith.constant 0 : index
    %c0_0 = arith.constant 0 : index
    %0 = vector.load %arg1[%c0, %c0_0] : memref<2x1024xbf16, #tpu.memory_space<vmem>>, vector<2x1024xbf16>
    %c0_1 = arith.constant 0 : index
    %c0_2 = arith.constant 0 : index
    %1 = vector.load %arg2[%c0_1, %c0_2] : memref<1024x392xbf16, #tpu.memory_space<vmem>>, vector<1024x392xbf16>
    %cst = arith.constant dense<0.000000e+00> : vector<2x392xf32>
    %2 = tpu.matmul %0, %1, %cst {dimension_numbers = #tpu.dot_dimension_numbers<[1], [0], [0], [1], [0, 0, 1, 1], [], []>} : vector<2x1024xbf16>, vector<1024x392xbf16>, vector<2x392xf32> -> vector<2x392xf32>
    %c0_3 = arith.constant 0 : index
    %c0_4 = arith.constant 0 : index
    %3 = vector.load %arg3[%c0_3, %c0_4] : memref<1x392xf32, #tpu.memory_space<vmem>>, vector<1x392xf32>
    %4 = vector.broadcast %3 : vector<1x392xf32> to vector<2x392xf32>
    %5 = arith.addf %2, %4 : vector<2x392xf32>
    %cst_5 = arith.constant 0.000000e+00 : f32
    %6 = vector.broadcast %cst_5 : f32 to vector<2x392xf32>
    %7 = arith.maximumf %5, %6 : vector<2x392xf32>
    %8 = arith.truncf %7 : vector<2x392xf32> to vector<2x392xbf16>
    %c0_6 = arith.constant 0 : index
    %c0_7 = arith.constant 0 : index
    %9 = vector.load %arg4[%c0_6, %c0_7] : memref<392x400xbf16, #tpu.memory_space<vmem>>, vector<392x400xbf16>
    %cst_8 = arith.constant dense<0.000000e+00> : vector<2x400xf32>
    %10 = tpu.matmul %8, %9, %cst_8 {dimension_numbers = #tpu.dot_dimension_numbers<[1], [0], [0], [1], [0, 0, 1, 1], [], []>} : vector<2x392xbf16>, vector<392x400xbf16>, vector<2x400xf32> -> vector<2x400xf32>
    %c0_9 = arith.constant 0 : index
    %c0_10 = arith.constant 0 : index
    %11 = vector.load %arg5[%c0_9, %c0_10] : memref<1x400xf32, #tpu.memory_space<vmem>>, vector<1x400xf32>
    %12 = vector.broadcast %11 : vector<1x400xf32> to vector<2x400xf32>
    %13 = arith.addf %10, %12 : vector<2x400xf32>
    %cst_11 = arith.constant 0.000000e+00 : f32
    %14 = vector.broadcast %cst_11 : f32 to vector<2x400xf32>
    %15 = arith.maximumf %13, %14 : vector<2x400xf32>
    %16 = arith.truncf %15 : vector<2x400xf32> to vector<2x400xbf16>
    %c0_12 = arith.constant 0 : index
    %c0_13 = arith.constant 0 : index
    %17 = vector.load %arg6[%c0_12, %c0_13] : memref<400x32xbf16, #tpu.memory_space<vmem>>, vector<400x32xbf16>
    %cst_14 = arith.constant dense<0.000000e+00> : vector<2x32xf32>
    %18 = tpu.matmul %16, %17, %cst_14 {dimension_numbers = #tpu.dot_dimension_numbers<[1], [0], [0], [1], [0, 0, 1, 1], [], []>} : vector<2x400xbf16>, vector<400x32xbf16>, vector<2x32xf32> -> vector<2x32xf32>
    %c0_15 = arith.constant 0 : index
    %c0_16 = arith.constant 0 : index
    %19 = vector.load %arg7[%c0_15, %c0_16] : memref<1x32xf32, #tpu.memory_space<vmem>>, vector<1x32xf32>
    %20 = vector.broadcast %19 : vector<1x32xf32> to vector<2x32xf32>
    %21 = arith.addf %18, %20 : vector<2x32xf32>
    %cst_17 = arith.constant 0.000000e+00 : f32
    %22 = vector.broadcast %cst_17 : f32 to vector<2x32xf32>
    %23 = arith.maximumf %21, %22 : vector<2x32xf32>
    %24 = arith.truncf %23 : vector<2x32xf32> to vector<2x32xbf16>
    %c0_18 = arith.constant 0 : index
    %c0_19 = arith.constant 0 : index
    %25 = vector.load %arg8[%c0_18, %c0_19] : memref<32x128xbf16, #tpu.memory_space<vmem>>, vector<32x128xbf16>
    %cst_20 = arith.constant dense<0.000000e+00> : vector<2x128xf32>
    %26 = tpu.matmul %24, %25, %cst_20 {dimension_numbers = #tpu.dot_dimension_numbers<[1], [0], [0], [1], [0, 0, 1, 1], [], []>} : vector<2x32xbf16>, vector<32x128xbf16>, vector<2x128xf32> -> vector<2x128xf32>
    %c0_21 = arith.constant 0 : index
    %c0_22 = arith.constant 0 : index
    %27 = vector.load %arg9[%c0_21, %c0_22] : memref<1x128xf32, #tpu.memory_space<vmem>>, vector<1x128xf32>
    %28 = vector.broadcast %27 : vector<1x128xf32> to vector<2x128xf32>
    %29 = arith.addf %26, %28 : vector<2x128xf32>
    %c0_23 = arith.constant 0 : index
    %c0_24 = arith.constant 0 : index
    %30 = vector.load %arg10[%c0_23, %c0_24] : memref<2x128xf32, #tpu.memory_space<vmem>>, vector<2x128xf32>
    tpu.vector_store %arg10[%c0_23, %c0_24], %29 {strides = array<i32>} : memref<2x128xf32, #tpu.memory_space<vmem>>, vector<2x128xf32>,
    return
  }
  func.func @transform_0(%arg0: i32) -> (i32, i32) {
    %c0_i32 = arith.constant 0 : i32
    %c0_i32_0 = arith.constant 0 : i32
    return %arg0, %c0_i32 : i32, i32
  }
  func.func @transform_1(%arg0: i32) -> (i32, i32) {
    %c0_i32 = arith.constant 0 : i32
    %c0_i32_0 = arith.constant 0 : i32
    %c0_i32_1 = arith.constant 0 : i32
    return %c0_i32, %c0_i32_0 : i32, i32
  }
  func.func @transform_2(%arg0: i32) -> (i32, i32) {
    %c0_i32 = arith.constant 0 : i32
    %c0_i32_0 = arith.constant 0 : i32
    %c0_i32_1 = arith.constant 0 : i32
    return %c0_i32, %c0_i32_0 : i32, i32
  }
  func.func @transform_3(%arg0: i32) -> (i32, i32) {
    %c0_i32 = arith.constant 0 : i32
    %c0_i32_0 = arith.constant 0 : i32
    %c0_i32_1 = arith.constant 0 : i32
    return %c0_i32, %c0_i32_0 : i32, i32
  }
  func.func @transform_4(%arg0: i32) -> (i32, i32) {
    %c0_i32 = arith.constant 0 : i32
    %c0_i32_0 = arith.constant 0 : i32
    %c0_i32_1 = arith.constant 0 : i32
    return %c0_i32, %c0_i32_0 : i32, i32
  }
  func.func @transform_5(%arg0: i32) -> (i32, i32) {
    %c0_i32 = arith.constant 0 : i32
    %c0_i32_0 = arith.constant 0 : i32
    %c0_i32_1 = arith.constant 0 : i32
    return %c0_i32, %c0_i32_0 : i32, i32
  }
  func.func @transform_6(%arg0: i32) -> (i32, i32) {
    %c0_i32 = arith.constant 0 : i32
    %c0_i32_0 = arith.constant 0 : i32
    %c0_i32_1 = arith.constant 0 : i32
    return %c0_i32, %c0_i32_0 : i32, i32
  }
  func.func @transform_7(%arg0: i32) -> (i32, i32) {
    %c0_i32 = arith.constant 0 : i32
    %c0_i32_0 = arith.constant 0 : i32
    %c0_i32_1 = arith.constant 0 : i32
    return %c0_i32, %c0_i32_0 : i32, i32
  }
  func.func @transform_8(%arg0: i32) -> (i32, i32) {
    %c0_i32 = arith.constant 0 : i32
    %c0_i32_0 = arith.constant 0 : i32
    %c0_i32_1 = arith.constant 0 : i32
    return %c0_i32, %c0_i32_0 : i32, i32
  }
  func.func @transform_9(%arg0: i32) -> (i32, i32) {
    %c0_i32 = arith.constant 0 : i32
    %c0_i32_0 = arith.constant 0 : i32
    return %arg0, %c0_i32 : i32, i32
  }
}

</mosaic_0001>

<bundles_post_ra>
// kernel: a2c_forward.1
= control target key start
LH: loop header
LB: loop body
LE: loop exit
PB: predicated region body
PF: predicated region fallthrough
CT: control target
= control target key end

     0   :  { %14 = vsyncpa [#allocation3], 0  ;;  %s4472_s0 = inlined_call_operand.vmem [shape: bf16[2,1024], index: 0, kind: input, shape index: {}]   ;;  %s4473_s1 = inlined_call_operand.hbm [shape: bf16[1024,392], index: 1, kind: input, shape index: {}]   ;;  %s4474_s2 = inlined_call_operand.vmem [shape: f32[1,392], index: 2, kind: input, shape index: {}]   ;;  %s4475_s3 = inlined_call_operand.hbm [shape: bf16[392,400], index: 3, kind: input, shape index: {}]   ;;  %s4476_s4 = inlined_call_operand.vmem [shape: f32[1,400], index: 4, kind: input, shape index: {}]   ;;  %s4477_s5 = inlined_call_operand.vmem [shape: bf16[400,32], index: 5, kind: input, shape index: {}]   ;;  %s4478_s6 = inlined_call_operand.vmem [shape: f32[1,32], index: 6, kind: input, shape index: {}]   ;;  %s4479_s7 = inlined_call_operand.vmem [shape: bf16[32,128], index: 7, kind: input, shape index: {}]   ;;  %s4480_s8 = inlined_call_operand.vmem [shape: f32[1,128], index: 8, kind: input, shape index: {}]   ;;  %s4481_s9 = inlined_call_operand.vmem [shape: f32[2,128], index: 9, kind: output, shape index: {}]  }
   0x1   :  { %15 = vsyncpa [#allocation5], 0  ;;  %s4216_s30 = smov [#allocation2]  }
   0x2   :  { %s23_s10 = sshll.u32 %s4216_s30, 4  ;;  %s24_s10 = int_to_ptr.vmem [resolvable:$true] %s23_s10 }
   0x3   :  { %s4180_s11 = scalar_lea.vmem %s24_s10, 32768  ;;  %p4185_p1 = scmp.lt.s32.totalorder %s24_s10, %s24_s10 }
   0x4   :  { %p4181_p0 = scmp.ne.s32.totalorder %s24_s10, %s4180_s11  ;;  %p4186_p2 = scmp.lt.s32.totalorder %s4180_s11, %s4180_s11 }
   0x6   :  { %p4187_p3 = por %p4186_p2, %p4185_p1 }
   0x8   :  { %p4188_p4 = pnand %p4187_p3, %p4181_p0 }
   0xa   :  { %4191 = shalt.err (!%p4188_p4)
}
   0xb   :  { %s4217_s12 = smov 256   ;;  %s4218_s13 = smov 16  }
   0xc   :  { %29 = dma.hbm_to_vmem [thread:$0]  %s4473_s1, 32768, %s24_s10, [#allocation3], %s4217_s12, %s4217_s12, %s4218_s13  }
   0xd   :  { %s4219_s16 = smov [#allocation4]  }
   0xe   :  { %s37_s17 = sshll.u32 %s4219_s16, 4  ;;  %s38_s17 = int_to_ptr.vmem [resolvable:$true] %s37_s17 }
   0xf   :  { %s4200_s18 = scalar_lea.vmem %s38_s17, 12544  ;;  %p4205_p6 = scmp.lt.s32.totalorder %s38_s17, %s38_s17 }
  0x10   :  { %p4201_p5 = scmp.ne.s32.totalorder %s38_s17, %s4200_s18  ;;  %p4206_p7 = scmp.lt.s32.totalorder %s4200_s18, %s4200_s18 }
  0x12   :  { %p4207_p8 = por %p4206_p7, %p4205_p6 }
  0x14   :  { %p4208_p9 = pnand %p4207_p8, %p4201_p5 }
  0x16   :  { %4211 = shalt.err (!%p4208_p9)
}
  0x17   :  { %43 = dma.hbm_to_vmem [thread:$0]  %s4475_s3, 12544, %s38_s17, [#allocation5], %s4217_s12, %s4217_s12, %s4218_s13  }
  0x18   :  { %4212 = dma.done.wait [#allocation3], 32768  }
  0x19   :  { %4213 = vsyncadd [#allocation3], 4294934528 }
  0x1a   :  { %4214 = dma.done.wait [#allocation5], 12544  }
  0x1b   :  { %4215 = vsyncadd [#allocation5], 4294954752  ;;  %v3612_v0 = vld [vmem:[#allocation2 + $0xe4] ss:$16 sps:$4 sm:$0xff]   ;;  %v3616_v2 = vld [vmem:[#allocation2 + $0xe0] ss:$16 sps:$4 sm:$0xff]   ;;  %v320_v36 = vlaneseq }
  0x1c   :  { %v3614_v1 = vld [vmem:[#allocation2 + $0x2e4] ss:$16 sps:$4 sm:$0xff]   ;;  %1678 = vmatprep.subr.bf16.mxu0 %v3612_v0  ;;  %v3617_v3 = vld [vmem:[#allocation2 + $0x2e0] ss:$16 sps:$4 sm:$0xff]   ;;  %v4220_v37 = vmov 1966171168  }
  0x1d   :  { %1719 = vmatprep.subr.bf16.mxu1 %v3614_v1  ;;  %v3618_v4 = vld [vmem:[#allocation2 + $0xc4] ss:$16 sps:$4 sm:$0xff]   ;;  %1679 = vmatpush1.bf16.msra.mxu0 %v3616_v2  ;;  %v3622_v6 = vld [vmem:[#allocation2 + $0xc0] ss:$16 sps:$4 sm:$0xff]   ;;  %v343_v38 = vunpack.c.l.s4 %v4220_v37  ;;  %v4280_v42 = vshrl.u32 %v320_v36, 7  ;;  %vm2628_vm0 = vcmask 1043456  }
  0x1e   :  { %1720 = vmatpush1.bf16.msra.mxu1 %v3617_v3  ;;  %v3620_v5 = vld [vmem:[#allocation2 + $0x2c4] ss:$16 sps:$4 sm:$0xff]   ;;  %1680 = vmatprep.subr.bf16.mxu0 %v3618_v4  ;;  %v3623_v7 = vld [vmem:[#allocation2 + $0x2c0] ss:$16 sps:$4 sm:$0xff]   ;;  %vm2624_vm1 = vcmask 64512   ;;  %vm3020_vm2 = vcmask 130048  }
  0x1f   :  { %1721 = vmatprep.subr.bf16.mxu1 %v3620_v5  ;;  %v3624_v8 = vld [vmem:[#allocation2 + $0xa4] ss:$16 sps:$4 sm:$0xff]   ;;  %v3628_v10 = vld [vmem:[#allocation2 + $0xa0] ss:$16 sps:$4 sm:$0xff]   ;;  %v344_v43 = vunpack.c.0.s8 %v343_v38  ;;  %vm4223_vm3 = vmmov 0   ;;  %vm3129_vm4 = vcmask 261120  }
  0x20   :  { %v3626_v9 = vld [vmem:[#allocation2 + $0x2a4] ss:$16 sps:$4 sm:$0xff]   ;;  %v3629_v11 = vld [vmem:[#allocation2 + $0x2a0] ss:$16 sps:$4 sm:$0xff]  }
  0x21   :  { %1681 = vmatpush1.bf16.msra.mxu0 %v3622_v6  ;;  %v3630_v12 = vld [vmem:[#allocation2 + $0x84] ss:$16 sps:$4 sm:$0xff]   ;;  %v3634_v14 = vld [vmem:[#allocation2 + $0x80] ss:$16 sps:$4 sm:$0xff]   ;;  %v347_v49 = vsub.s32 %v344_v43, %v4280_v42 }
  0x22   :  { %1722 = vmatpush1.bf16.msra.mxu1 %v3623_v7  ;;  %1682 = vmatprep.subr.bf16.mxu0 %v3624_v8  ;;  %v3632_v13 = vld [vmem:[#allocation2 + $0x284] ss:$16 sps:$4 sm:$0xff]   ;;  %v3635_v15 = vld [vmem:[#allocation2 + $0x280] ss:$16 sps:$4 sm:$0xff]  }
  0x23   :  { %1723 = vmatprep.subr.bf16.mxu1 %v3626_v9  ;;  %v3636_v16 = vld [vmem:[#allocation2 + $0x64] ss:$16 sps:$4 sm:$0xff]   ;;  %v3640_v18 = vld [vmem:[#allocation2 + $0x60] ss:$16 sps:$4 sm:$0xff]  }
  0x24   :  { %v3638_v17 = vld [vmem:[#allocation2 + $0x264] ss:$16 sps:$4 sm:$0xff]   ;;  %v3641_v19 = vld [vmem:[#allocation2 + $0x260] ss:$16 sps:$4 sm:$0xff]  }
  0x25   :  { %1683 = vmatpush1.bf16.msra.mxu0 %v3628_v10  ;;  %v3642_v20 = vld [vmem:[#allocation2 + $0x44] ss:$16 sps:$4 sm:$0xff]   ;;  %v3646_v22 = vld [vmem:[#allocation2 + $0x40] ss:$16 sps:$4 sm:$0xff]  }
  0x26   :  { %1724 = vmatpush1.bf16.msra.mxu1 %v3629_v11  ;;  %1684 = vmatprep.subr.bf16.mxu0 %v3630_v12  ;;  %v3644_v21 = vld [vmem:[#allocation2 + $0x244] ss:$16 sps:$4 sm:$0xff]   ;;  %v3647_v23 = vld [vmem:[#allocation2 + $0x240] ss:$16 sps:$4 sm:$0xff]  }
  0x27   :  { %1725 = vmatprep.subr.bf16.mxu1 %v3632_v13  ;;  %v3648_v24 = vld [vmem:[#allocation2 + $0x24] ss:$16 sps:$4 sm:$0xff]   ;;  %v3652_v26 = vld [vmem:[#allocation2 + $0x20] ss:$16 sps:$4 sm:$0xff]  }
  0x28   :  { %v3650_v25 = vld [vmem:[#allocation2 + $0x224] ss:$16 sps:$4 sm:$0xff]   ;;  %v3653_v27 = vld [vmem:[#allocation2 + $0x220] ss:$16 sps:$4 sm:$0xff]  }
  0x29   :  { %1685 = vmatpush1.bf16.msra.mxu0 %v3634_v14  ;;  %v3654_v28 = vld [vmem:[#allocation2 + $0x4] ss:$16 sps:$4 sm:$0xff]   ;;  %v3658_v30 = vld [vmem:[#allocation2] ss:$16 sps:$4 sm:$0xff]  }
  0x2a   :  { %1726 = vmatpush1.bf16.msra.mxu1 %v3635_v15  ;;  %1686 = vmatprep.subr.bf16.mxu0 %v3636_v16  ;;  %v3656_v29 = vld [vmem:[#allocation2 + $0x204] ss:$16 sps:$4 sm:$0xff]   ;;  %v3659_v31 = vld [vmem:[#allocation2 + $0x200] ss:$16 sps:$4 sm:$0xff]  }
  0x2b   :  { %1727 = vmatprep.subr.bf16.mxu1 %v3638_v17  ;;  %v3660_v32 = vld [vmem:[#allocation2 + $0x1e4] ss:$16 sps:$4 sm:$0xff]   ;;  %v3664_v34 = vld [vmem:[#allocation2 + $0x1e0] ss:$16 sps:$4 sm:$0xff]  }
  0x2c   :  { %v3662_v33 = vld [vmem:[#allocation2 + $0x3e4] ss:$16 sps:$4 sm:$0xff]   ;;  %v3665_v35 = vld [vmem:[#allocation2 + $0x3e0] ss:$16 sps:$4 sm:$0xff]  }
  0x2d   :  { %1687 = vmatpush1.bf16.msra.mxu0 %v3640_v18  ;;  %v3666_v39 = vld [vmem:[#allocation2 + $0x1c4] ss:$16 sps:$4 sm:$0xff]   ;;  %v3670_v41 = vld [vmem:[#allocation2 + $0x1c0] ss:$16 sps:$4 sm:$0xff]  }
  0x2e   :  { %1728 = vmatpush1.bf16.msra.mxu1 %v3641_v19  ;;  %1688 = vmatprep.subr.bf16.mxu0 %v3642_v20  ;;  %v3668_v40 = vld [vmem:[#allocation2 + $0x3c4] ss:$16 sps:$4 sm:$0xff]   ;;  %v3671_v44 = vld [vmem:[#allocation2 + $0x3c0] ss:$16 sps:$4 sm:$0xff]  }
  0x2f   :  { %1729 = vmatprep.subr.bf16.mxu1 %v3644_v21  ;;  %v3672_v45 = vld [vmem:[#allocation2 + $0x1a4] ss:$16 sps:$4 sm:$0xff]   ;;  %v3676_v47 = vld [vmem:[#allocation2 + $0x1a0] ss:$16 sps:$4 sm:$0xff]  }
  0x30   :  { %v3674_v46 = vld [vmem:[#allocation2 + $0x3a4] ss:$16 sps:$4 sm:$0xff]   ;;  %v3677_v48 = vld [vmem:[#allocation2 + $0x3a0] ss:$16 sps:$4 sm:$0xff]  }
  0x31   :  { %1689 = vmatpush1.bf16.msra.mxu0 %v3646_v22  ;;  %v3678_v50 = vld [vmem:[#allocation2 + $0x184] ss:$16 sps:$4 sm:$0xff]   ;;  %v3682_v53 = vld [vmem:[#allocation2 + $0x180] ss:$16 sps:$4 sm:$0xff]  }
  0x32   :  { %1730 = vmatpush1.bf16.msra.mxu1 %v3647_v23  ;;  %1690 = vmatprep.subr.bf16.mxu0 %v3648_v24  ;;  %v3680_v51 = vld [vmem:[#allocation2 + $0x384] ss:$16 sps:$4 sm:$0xff]   ;;  %v3683_v56 = vld [vmem:[#allocation2 + $0x380] ss:$16 sps:$4 sm:$0xff]  }
  0x33   :  { %1731 = vmatprep.subr.bf16.mxu1 %v3650_v25  ;;  %v61_v52 = vld [vmem:[%s4472_s0] sm:$0xff] }
  0x34   :  { %v348_v54 = vrot.slane %v61_v52, %v347_v49  ;;  %v341_v55 = vcombine.high %v61_v52, %v61_v52  ;;  %v3684_v57 = vld [vmem:[#allocation2 + $0x164] ss:$16 sps:$4 sm:$0xff]   ;;  %v3688_v61 = vld [vmem:[#allocation2 + $0x160] ss:$16 sps:$4 sm:$0xff]  }
  0x35   :  { %1691 = vmatpush1.bf16.msra.mxu0 %v3652_v26  ;;  %v3686_v58 = vld [vmem:[#allocation2 + $0x364] ss:$16 sps:$4 sm:$0xff]   ;;  %v3689_v0 = vld [vmem:[#allocation2 + $0x360] ss:$16 sps:$4 sm:$0xff]  }
  0x36   :  { %1732 = vmatpush1.bf16.msra.mxu1 %v3653_v27  ;;  %1692 = vmatprep.subr.bf16.mxu0 %v3654_v28  ;;  %v356_v59 = vcombine.high %v348_v54, %v348_v54  ;;  %v355_v60 = vrot.slane %v341_v55, %v347_v49  ;;  %v3690_v1 = vld [vmem:[#allocation2 + $0x144] ss:$16 sps:$4 sm:$0xff]   ;;  %v3694_v4 = vld [vmem:[#allocation2 + $0x140] ss:$16 sps:$4 sm:$0xff]   ;;  %v4296_v14 = vrot.slane %v348_v54, %v347_v49 }
  0x37   :  { %1733 = vmatprep.subr.bf16.mxu1 %v3656_v29  ;;  %v3692_v2 = vld [vmem:[#allocation2 + $0x344] ss:$16 sps:$4 sm:$0xff]   ;;  %v3695_v5 = vld [vmem:[#allocation2 + $0x340] ss:$16 sps:$4 sm:$0xff]  }
  0x38   :  { %v4286_v62 = vrot.slane %v356_v59, %v347_v49  ;;  %v4288_v63 = vrot.slane %v355_v60, %v347_v49  ;;  %v3696_v6 = vld [vmem:[#allocation2 + $0x124] ss:$16 sps:$4 sm:$0xff]   ;;  %v3700_v8 = vld [vmem:[#allocation2 + $0x120] ss:$16 sps:$4 sm:$0xff]   ;;  %v357_v12 = vcombine.high %v355_v60, %v355_v60  ;;  %v4302_v19 = vcombine.high %v4296_v14, %v4296_v14 }
  0x39   :  { %1693 = vmatpush1.bf16.msra.mxu0 %v3658_v30  ;;  %v3698_v7 = vld [vmem:[#allocation2 + $0x324] ss:$16 sps:$4 sm:$0xff]   ;;  %v3701_v9 = vld [vmem:[#allocation2 + $0x320] ss:$16 sps:$4 sm:$0xff]  }
  0x3a   :  { %1734 = vmatpush1.bf16.msra.mxu1 %v3659_v31  ;;  %1694 = vmatprep.subr.bf16.mxu0 %v3660_v32  ;;  %v4292_v3 = vcombine.high %v4286_v62, %v4286_v62  ;;  %v3702_v10 = vld [vmem:[#allocation2 + $0x104] ss:$16 sps:$4 sm:$0xff]   ;;  %v3706_v13 = vld [vmem:[#allocation2 + $0x100] ss:$16 sps:$4 sm:$0xff]   ;;  %v4298_v18 = vrot.slane %v357_v12, %v347_v49 }
  0x3b   :  { %1735 = vmatprep.subr.bf16.mxu1 %v3662_v33  ;;  %1710 = vmatprep.mubr.bf16.mxu0 %v4286_v62  ;;  %v3704_v11 = vld [vmem:[#allocation2 + $0x304] ss:$16 sps:$4 sm:$0xff]   ;;  %v3707_v15 = vld [vmem:[#allocation2 + $0x300] ss:$16 sps:$4 sm:$0xff]  }
  0x3c   :  { %1751 = vmatprep.mubr.bf16.mxu1 %v4292_v3  ;;  %v3710_v16 = vld [vmem:[#allocation2 + $0x4e4] ss:$16 sps:$4 sm:$0xff]   ;;  %v3708_v20 = vld [vmem:[#allocation2 + $0x4e0] ss:$16 sps:$4 sm:$0xff]   ;;  %v4306_v24 = vcombine.high %v4298_v18, %v4298_v18 }
  0x3d   :  { %1695 = vmatpush2.bf16.msra.mxu0 %v3664_v34  ;;  %v3713_v17 = vld [vmem:[#allocation2 + $0x6e4] ss:$16 sps:$4 sm:$0xff]   ;;  %v3711_v21 = vld [vmem:[#allocation2 + $0x6e0] ss:$16 sps:$4 sm:$0xff]  }
  0x3e   :  { %1736 = vmatpush2.bf16.msra.mxu1 %v3665_v35  ;;  %1696 = vmatprep.subr.bf16.mxu0 %v3666_v39  ;;  %v3716_v22 = vld [vmem:[#allocation2 + $0x4c4] ss:$16 sps:$4 sm:$0xff]   ;;  %v3714_v25 = vld [vmem:[#allocation2 + $0x4c0] ss:$16 sps:$4 sm:$0xff]  }
  0x3f   :  { %1737 = vmatprep.subr.bf16.mxu1 %v3668_v40  ;;  %v3719_v23 = vld [vmem:[#allocation2 + $0x6c4] ss:$16 sps:$4 sm:$0xff]   ;;  %v3717_v26 = vld [vmem:[#allocation2 + $0x6c0] ss:$16 sps:$4 sm:$0xff]  }
  0x40   :  { %v3722_v27 = vld [vmem:[#allocation2 + $0x4a4] ss:$16 sps:$4 sm:$0xff]   ;;  %v3720_v29 = vld [vmem:[#allocation2 + $0x4a0] ss:$16 sps:$4 sm:$0xff]  }
  0x41   :  { %1697 = vmatpush2.bf16.msra.mxu0 %v3670_v41  ;;  %v3725_v28 = vld [vmem:[#allocation2 + $0x6a4] ss:$16 sps:$4 sm:$0xff]   ;;  %v3723_v30 = vld [vmem:[#allocation2 + $0x6a0] ss:$16 sps:$4 sm:$0xff]  }
  0x42   :  { %1738 = vmatpush2.bf16.msra.mxu1 %v3671_v44  ;;  %1698 = vmatprep.subr.bf16.mxu0 %v3672_v45  ;;  %v3728_v31 = vld [vmem:[#allocation2 + $0x484] ss:$16 sps:$4 sm:$0xff]   ;;  %v3726_v33 = vld [vmem:[#allocation2 + $0x480] ss:$16 sps:$4 sm:$0xff]  }
  0x43   :  { %1739 = vmatprep.subr.bf16.mxu1 %v3674_v46  ;;  %v3731_v32 = vld [vmem:[#allocation2 + $0x684] ss:$16 sps:$4 sm:$0xff]   ;;  %v3729_v34 = vld [vmem:[#allocation2 + $0x680] ss:$16 sps:$4 sm:$0xff]  }
  0x44   :  { %v3734_v35 = vld [vmem:[#allocation2 + $0x464] ss:$16 sps:$4 sm:$0xff]   ;;  %v3732_v37 = vld [vmem:[#allocation2 + $0x460] ss:$16 sps:$4 sm:$0xff]  }
  0x45   :  { %1699 = vmatpush2.bf16.msra.mxu0 %v3676_v47  ;;  %v3737_v36 = vld [vmem:[#allocation2 + $0x664] ss:$16 sps:$4 sm:$0xff]   ;;  %v3735_v38 = vld [vmem:[#allocation2 + $0x660] ss:$16 sps:$4 sm:$0xff]  }
  0x46   :  { %1740 = vmatpush2.bf16.msra.mxu1 %v3677_v48  ;;  %1700 = vmatprep.subr.bf16.mxu0 %v3678_v50  ;;  %v3740_v39 = vld [vmem:[#allocation2 + $0x444] ss:$16 sps:$4 sm:$0xff]   ;;  %v3738_v41 = vld [vmem:[#allocation2 + $0x440] ss:$16 sps:$4 sm:$0xff]  }
  0x47   :  { %1741 = vmatprep.subr.bf16.mxu1 %v3680_v51  ;;  %v3743_v40 = vld [vmem:[#allocation2 + $0x644] ss:$16 sps:$4 sm:$0xff]   ;;  %v3741_v43 = vld [vmem:[#allocation2 + $0x640] ss:$16 sps:$4 sm:$0xff]  }
  0x48   :  { %v3746_v44 = vld [vmem:[#allocation2 + $0x424] ss:$16 sps:$4 sm:$0xff]   ;;  %v3744_v46 = vld [vmem:[#allocation2 + $0x420] ss:$16 sps:$4 sm:$0xff]  }
  0x49   :  { %1701 = vmatpush2.bf16.msra.mxu0 %v3682_v53  ;;  %v3749_v45 = vld [vmem:[#allocation2 + $0x624] ss:$16 sps:$4 sm:$0xff]   ;;  %v3747_v47 = vld [vmem:[#allocation2 + $0x620] ss:$16 sps:$4 sm:$0xff]  }
  0x4a   :  { %1742 = vmatpush2.bf16.msra.mxu1 %v3683_v56  ;;  %1702 = vmatprep.subr.bf16.mxu0 %v3684_v57  ;;  %v3752_v48 = vld [vmem:[#allocation2 + $0x404] ss:$16 sps:$4 sm:$0xff]   ;;  %v3750_v50 = vld [vmem:[#allocation2 + $0x400] ss:$16 sps:$4 sm:$0xff]  }
  0x4b   :  { %1743 = vmatprep.subr.bf16.mxu1 %v3686_v58  ;;  %v3755_v49 = vld [vmem:[#allocation2 + $0x604] ss:$16 sps:$4 sm:$0xff]   ;;  %v3753_v51 = vld [vmem:[#allocation2 + $0x600] ss:$16 sps:$4 sm:$0xff]  }
  0x4c   :  { %v3758_v52 = vld [vmem:[#allocation2 + $0x5e4] ss:$16 sps:$4 sm:$0xff]   ;;  %v3756_v54 = vld [vmem:[#allocation2 + $0x5e0] ss:$16 sps:$4 sm:$0xff]  }
  0x4d   :  { %1703 = vmatpush2.bf16.msra.mxu0 %v3688_v61  ;;  %v3761_v53 = vld [vmem:[#allocation2 + $0x7e4] ss:$16 sps:$4 sm:$0xff]   ;;  %v3759_v55 = vld [vmem:[#allocation2 + $0x7e0] ss:$16 sps:$4 sm:$0xff]  }
  0x4e   :  { %1744 = vmatpush2.bf16.msra.mxu1 %v3689_v0  ;;  %1704 = vmatprep.subr.bf16.mxu0 %v3690_v1  ;;  %v3764_v56 = vld [vmem:[#allocation2 + $0x5c4] ss:$16 sps:$4 sm:$0xff]   ;;  %v3762_v58 = vld [vmem:[#allocation2 + $0x5c0] ss:$16 sps:$4 sm:$0xff]  }
  0x4f   :  { %1745 = vmatprep.subr.bf16.mxu1 %v3692_v2  ;;  %v3767_v57 = vld [vmem:[#allocation2 + $0x7c4] ss:$16 sps:$4 sm:$0xff]   ;;  %v3765_v59 = vld [vmem:[#allocation2 + $0x7c0] ss:$16 sps:$4 sm:$0xff]  }
  0x50   :  { %v3770_v60 = vld [vmem:[#allocation2 + $0x5a4] ss:$16 sps:$4 sm:$0xff]   ;;  %v3768_v0 = vld [vmem:[#allocation2 + $0x5a0] ss:$16 sps:$4 sm:$0xff]  }
  0x51   :  { %1705 = vmatpush2.bf16.msra.mxu0 %v3694_v4  ;;  %v3773_v61 = vld [vmem:[#allocation2 + $0x7a4] ss:$16 sps:$4 sm:$0xff]   ;;  %v3771_v1 = vld [vmem:[#allocation2 + $0x7a0] ss:$16 sps:$4 sm:$0xff]  }
  0x52   :  { %1746 = vmatpush2.bf16.msra.mxu1 %v3695_v5  ;;  %1706 = vmatprep.subr.bf16.mxu0 %v3696_v6  ;;  %v3776_v2 = vld [vmem:[#allocation2 + $0x584] ss:$16 sps:$4 sm:$0xff]   ;;  %v3774_v5 = vld [vmem:[#allocation2 + $0x580] ss:$16 sps:$4 sm:$0xff]  }
  0x53   :  { %1747 = vmatprep.subr.bf16.mxu1 %v3698_v7  ;;  %v3779_v4 = vld [vmem:[#allocation2 + $0x784] ss:$16 sps:$4 sm:$0xff]   ;;  %v3777_v6 = vld [vmem:[#allocation2 + $0x780] ss:$16 sps:$4 sm:$0xff]  }
  0x54   :  { %v3782_v7 = vld [vmem:[#allocation2 + $0x564] ss:$16 sps:$4 sm:$0xff]  }
  0x55   :  { %1707 = vmatpush2.bf16.msra.mxu0 %v3700_v8  ;;  %v3785_v8 = vld [vmem:[#allocation2 + $0x764] ss:$16 sps:$4 sm:$0xff]  }
  0x56   :  { %1748 = vmatpush2.bf16.msra.mxu1 %v3701_v9  ;;  %1708 = vmatprep.subr.bf16.mxu0 %v3702_v10  ;;  %v3780_v9 = vld [vmem:[#allocation2 + $0x560] ss:$16 sps:$4 sm:$0xff]   ;;  %v3791_v12 = vld [vmem:[#allocation2 + $0x744] ss:$16 sps:$4 sm:$0xff]  }
  0x57   :  { %1749 = vmatprep.subr.bf16.mxu1 %v3704_v11  ;;  %v3783_v10 = vld [vmem:[#allocation2 + $0x760] ss:$16 sps:$4 sm:$0xff]   ;;  %v3788_v11 = vld [vmem:[#allocation2 + $0x544] ss:$16 sps:$4 sm:$0xff]  }
  0x59   :  { %1709 = vmatpush2.bf16.msra.mxu0 %v3706_v13  ;;  %v3786_v13 = vld [vmem:[#allocation2 + $0x540] ss:$16 sps:$4 sm:$0xff]  }
  0x5a   :  { %1750 = vmatpush2.bf16.msra.mxu1 %v3707_v15  ;;  %1760 = vmatprep.subr.bf16.mxu0 %v3710_v16  ;;  %v3789_v15 = vld [vmem:[#allocation2 + $0x740] ss:$16 sps:$4 sm:$0xff]   ;;  %v3794_v16 = vld [vmem:[#allocation2 + $0x524] ss:$16 sps:$4 sm:$0xff]  }
  0x5b   :  { %1801 = vmatprep.subr.bf16.mxu1 %v3713_v17  ;;  %v3797_v17 = vld [vmem:[#allocation2 + $0x724] ss:$16 sps:$4 sm:$0xff]  }
  0x5c   :  { %1711 = vmatmul.mubr.bf16.vlgmr.msra.gmra.mxu0 %v4296_v14 }
  0x5d   :  { %1752 = vmatmul.mubr.bf16.vlgmr.msra.gmra.mxu1 %v4302_v19  ;;  %1761 = vmatpush1.bf16.msra.mxu0 %v3708_v20  ;;  %v3792_v20 = vld [vmem:[#allocation2 + $0x520] ss:$16 sps:$4 sm:$0xff]  }
  0x5e   :  { %1802 = vmatpush1.bf16.msra.mxu1 %v3711_v21  ;;  %1762 = vmatprep.subr.bf16.mxu0 %v3716_v22  ;;  %v3795_v21 = vld [vmem:[#allocation2 + $0x720] ss:$16 sps:$4 sm:$0xff]   ;;  %v3800_v22 = vld [vmem:[#allocation2 + $0x504] ss:$16 sps:$4 sm:$0xff]  }
  0x5f   :  { %1803 = vmatprep.subr.bf16.mxu1 %v3719_v23  ;;  %1792 = vmatprep.mubr.bf16.mxu0 %v4298_v18  ;;  %v3803_v23 = vld [vmem:[#allocation2 + $0x704] ss:$16 sps:$4 sm:$0xff]  }
  0x60   :  { %1833 = vmatprep.mubr.bf16.mxu1 %v4306_v24 }
  0x61   :  { %1763 = vmatpush1.bf16.msra.mxu0 %v3714_v25  ;;  %v3798_v25 = vld [vmem:[#allocation2 + $0x500] ss:$16 sps:$4 sm:$0xff]  }
  0x62   :  { %1804 = vmatpush1.bf16.msra.mxu1 %v3717_v26  ;;  %1764 = vmatprep.subr.bf16.mxu0 %v3722_v27  ;;  %v3801_v26 = vld [vmem:[#allocation2 + $0x700] ss:$16 sps:$4 sm:$0xff]   ;;  %v3807_v27 = vld [vmem:[#allocation2 + $0xec] ss:$16 sps:$4 sm:$0xff]  }
  0x63   :  { %1805 = vmatprep.subr.bf16.mxu1 %v3725_v28  ;;  %v3810_v28 = vld [vmem:[#allocation2 + $0x2ec] ss:$16 sps:$4 sm:$0xff]  }
  0x65   :  { %1765 = vmatpush1.bf16.msra.mxu0 %v3720_v29  ;;  %v4314_v29 = vcombine.high %v4288_v63, %v4288_v63 }
  0x66   :  { %1806 = vmatpush1.bf16.msra.mxu1 %v3723_v30  ;;  %1766 = vmatprep.subr.bf16.mxu0 %v3728_v31  ;;  %v3805_v30 = vld [vmem:[#allocation2 + $0xe8] ss:$16 sps:$4 sm:$0xff]  }
  0x67   :  { %1807 = vmatprep.subr.bf16.mxu1 %v3731_v32  ;;  %v3808_v31 = vld [vmem:[#allocation2 + $0x2e8] ss:$16 sps:$4 sm:$0xff]   ;;  %v3813_v32 = vld [vmem:[#allocation2 + $0xcc] ss:$16 sps:$4 sm:$0xff]  }
  0x69   :  { %1767 = vmatpush1.bf16.msra.mxu0 %v3726_v33  ;;  %v3816_v33 = vld [vmem:[#allocation2 + $0x2cc] ss:$16 sps:$4 sm:$0xff]  }
  0x6a   :  { %1808 = vmatpush1.bf16.msra.mxu1 %v3729_v34  ;;  %1768 = vmatprep.subr.bf16.mxu0 %v3734_v35  ;;  %v3811_v34 = vld [vmem:[#allocation2 + $0xc8] ss:$16 sps:$4 sm:$0xff]  }
  0x6b   :  { %1809 = vmatprep.subr.bf16.mxu1 %v3737_v36  ;;  %v3814_v35 = vld [vmem:[#allocation2 + $0x2c8] ss:$16 sps:$4 sm:$0xff]   ;;  %v3819_v36 = vld [vmem:[#allocation2 + $0xac] ss:$16 sps:$4 sm:$0xff]  }
  0x6d   :  { %1769 = vmatpush1.bf16.msra.mxu0 %v3732_v37  ;;  %v3822_v37 = vld [vmem:[#allocation2 + $0x2ac] ss:$16 sps:$4 sm:$0xff]  }
  0x6e   :  { %1810 = vmatpush1.bf16.msra.mxu1 %v3735_v38  ;;  %1770 = vmatprep.subr.bf16.mxu0 %v3740_v39  ;;  %v3817_v38 = vld [vmem:[#allocation2 + $0xa8] ss:$16 sps:$4 sm:$0xff]  }
  0x6f   :  { %1811 = vmatprep.subr.bf16.mxu1 %v3743_v40  ;;  %v3820_v39 = vld [vmem:[#allocation2 + $0x2a8] ss:$16 sps:$4 sm:$0xff]   ;;  %v3825_v40 = vld [vmem:[#allocation2 + $0x8c] ss:$16 sps:$4 sm:$0xff]  }
  0x71   :  { %1771 = vmatpush1.bf16.msra.mxu0 %v3738_v41  ;;  %v3828_v41 = vld [vmem:[#allocation2 + $0x28c] ss:$16 sps:$4 sm:$0xff]  }
  0x72   :  { %1812 = vmatpush1.bf16.msra.mxu1 %v3741_v43  ;;  %1772 = vmatprep.subr.bf16.mxu0 %v3746_v44  ;;  %v3823_v43 = vld [vmem:[#allocation2 + $0x88] ss:$16 sps:$4 sm:$0xff]  }
  0x73   :  { %1813 = vmatprep.subr.bf16.mxu1 %v3749_v45  ;;  %v3826_v44 = vld [vmem:[#allocation2 + $0x288] ss:$16 sps:$4 sm:$0xff]   ;;  %v3831_v45 = vld [vmem:[#allocation2 + $0x6c] ss:$16 sps:$4 sm:$0xff]  }
  0x75   :  { %1773 = vmatpush1.bf16.msra.mxu0 %v3744_v46  ;;  %v3834_v46 = vld [vmem:[#allocation2 + $0x26c] ss:$16 sps:$4 sm:$0xff]  }
  0x76   :  { %1814 = vmatpush1.bf16.msra.mxu1 %v3747_v47  ;;  %1774 = vmatprep.subr.bf16.mxu0 %v3752_v48  ;;  %v3829_v47 = vld [vmem:[#allocation2 + $0x68] ss:$16 sps:$4 sm:$0xff]   ;;  %v3840_v48 = vld [vmem:[#allocation2 + $0x24c] ss:$16 sps:$4 sm:$0xff]  }
  0x77   :  { %1815 = vmatprep.subr.bf16.mxu1 %v3755_v49  ;;  %v3835_v49 = vld [vmem:[#allocation2 + $0x48] ss:$16 sps:$4 sm:$0xff]  }
  0x79   :  { %1775 = vmatpush1.bf16.msra.mxu0 %v3750_v50  ;;  %v3838_v50 = vld [vmem:[#allocation2 + $0x248] ss:$16 sps:$4 sm:$0xff]  }
  0x7a   :  { %1816 = vmatpush1.bf16.msra.mxu1 %v3753_v51  ;;  %1776 = vmatprep.subr.bf16.mxu0 %v3758_v52  ;;  %v3843_v51 = vld [vmem:[#allocation2 + $0x2c] ss:$16 sps:$4 sm:$0xff]  }
  0x7b   :  { %1817 = vmatprep.subr.bf16.mxu1 %v3761_v53  ;;  %v3846_v52 = vld [vmem:[#allocation2 + $0x22c] ss:$16 sps:$4 sm:$0xff]   ;;  %v3841_v53 = vld [vmem:[#allocation2 + $0x28] ss:$16 sps:$4 sm:$0xff]  }
  0x7d   :  { %1777 = vmatpush2.bf16.msra.mxu0 %v3756_v54  ;;  %v3844_v54 = vld [vmem:[#allocation2 + $0x228] ss:$16 sps:$4 sm:$0xff]  }
  0x7e   :  { %1818 = vmatpush2.bf16.msra.mxu1 %v3759_v55  ;;  %1778 = vmatprep.subr.bf16.mxu0 %v3764_v56  ;;  %v3849_v55 = vld [vmem:[#allocation2 + $0xc] ss:$16 sps:$4 sm:$0xff]  }
  0x7f   :  { %1819 = vmatprep.subr.bf16.mxu1 %v3767_v57  ;;  %v3852_v56 = vld [vmem:[#allocation2 + $0x20c] ss:$16 sps:$4 sm:$0xff]   ;;  %v3847_v57 = vld [vmem:[#allocation2 + $0x8] ss:$16 sps:$4 sm:$0xff]  }
  0x81   :  { %1779 = vmatpush2.bf16.msra.mxu0 %v3762_v58  ;;  %v3850_v58 = vld [vmem:[#allocation2 + $0x208] ss:$16 sps:$4 sm:$0xff]  }
  0x82   :  { %1820 = vmatpush2.bf16.msra.mxu1 %v3765_v59  ;;  %1780 = vmatprep.subr.bf16.mxu0 %v3770_v60  ;;  %v3855_v59 = vld [vmem:[#allocation2 + $0x1ec] ss:$16 sps:$4 sm:$0xff]  }
  0x83   :  { %1821 = vmatprep.subr.bf16.mxu1 %v3773_v61  ;;  %v3858_v60 = vld [vmem:[#allocation2 + $0x3ec] ss:$16 sps:$4 sm:$0xff]   ;;  %v3853_v61 = vld [vmem:[#allocation2 + $0x1e8] ss:$16 sps:$4 sm:$0xff]  }
  0x85   :  { %1781 = vmatpush2.bf16.msra.mxu0 %v3768_v0  ;;  %v3856_v0 = vld [vmem:[#allocation2 + $0x3e8] ss:$16 sps:$4 sm:$0xff]  }
  0x86   :  { %1822 = vmatpush2.bf16.msra.mxu1 %v3771_v1  ;;  %1782 = vmatprep.subr.bf16.mxu0 %v3776_v2  ;;  %v3861_v1 = vld [vmem:[#allocation2 + $0x1cc] ss:$16 sps:$4 sm:$0xff]  }
  0x87   :  { %1823 = vmatprep.subr.bf16.mxu1 %v3779_v4  ;;  %v3864_v2 = vld [vmem:[#allocation2 + $0x3cc] ss:$16 sps:$4 sm:$0xff]   ;;  %v3859_v4 = vld [vmem:[#allocation2 + $0x1c8] ss:$16 sps:$4 sm:$0xff]  }
  0x89   :  { %1783 = vmatpush2.bf16.msra.mxu0 %v3774_v5  ;;  %v3862_v5 = vld [vmem:[#allocation2 + $0x3c8] ss:$16 sps:$4 sm:$0xff]  }
  0x8a   :  { %1824 = vmatpush2.bf16.msra.mxu1 %v3777_v6  ;;  %1784 = vmatprep.subr.bf16.mxu0 %v3782_v7  ;;  %v3867_v6 = vld [vmem:[#allocation2 + $0x1ac] ss:$16 sps:$4 sm:$0xff]  }
  0x8b   :  { %1825 = vmatprep.subr.bf16.mxu1 %v3785_v8  ;;  %v3870_v7 = vld [vmem:[#allocation2 + $0x3ac] ss:$16 sps:$4 sm:$0xff]   ;;  %v3865_v8 = vld [vmem:[#allocation2 + $0x1a8] ss:$16 sps:$4 sm:$0xff]  }
  0x8d   :  { %1785 = vmatpush2.bf16.msra.mxu0 %v3780_v9  ;;  %v3868_v9 = vld [vmem:[#allocation2 + $0x3a8] ss:$16 sps:$4 sm:$0xff]  }
  0x8e   :  { %1826 = vmatpush2.bf16.msra.mxu1 %v3783_v10  ;;  %1786 = vmatprep.subr.bf16.mxu0 %v3788_v11  ;;  %v3873_v10 = vld [vmem:[#allocation2 + $0x18c] ss:$16 sps:$4 sm:$0xff]  }
  0x8f   :  { %1827 = vmatprep.subr.bf16.mxu1 %v3791_v12  ;;  %v3876_v11 = vld [vmem:[#allocation2 + $0x38c] ss:$16 sps:$4 sm:$0xff]   ;;  %v3871_v12 = vld [vmem:[#allocation2 + $0x188] ss:$16 sps:$4 sm:$0xff]  }
  0x91   :  { %1787 = vmatpush2.bf16.msra.mxu0 %v3786_v13  ;;  %v3874_v13 = vld [vmem:[#allocation2 + $0x388] ss:$16 sps:$4 sm:$0xff]  }
  0x92   :  { %1828 = vmatpush2.bf16.msra.mxu1 %v3789_v15  ;;  %1788 = vmatprep.subr.bf16.mxu0 %v3794_v16  ;;  %v3879_v15 = vld [vmem:[#allocation2 + $0x16c] ss:$16 sps:$4 sm:$0xff]  }
  0x93   :  { %1829 = vmatprep.subr.bf16.mxu1 %v3797_v17  ;;  %v3882_v16 = vld [vmem:[#allocation2 + $0x36c] ss:$16 sps:$4 sm:$0xff]   ;;  %v3877_v17 = vld [vmem:[#allocation2 + $0x168] ss:$16 sps:$4 sm:$0xff]  }
  0x95   :  { %1789 = vmatpush2.bf16.msra.mxu0 %v3792_v20  ;;  %v3880_v20 = vld [vmem:[#allocation2 + $0x368] ss:$16 sps:$4 sm:$0xff]  }
  0x96   :  { %1830 = vmatpush2.bf16.msra.mxu1 %v3795_v21  ;;  %1790 = vmatprep.subr.bf16.mxu0 %v3800_v22  ;;  %v3885_v21 = vld [vmem:[#allocation2 + $0x14c] ss:$16 sps:$4 sm:$0xff]  }
  0x97   :  { %1831 = vmatprep.subr.bf16.mxu1 %v3803_v23  ;;  %v3888_v22 = vld [vmem:[#allocation2 + $0x34c] ss:$16 sps:$4 sm:$0xff]   ;;  %v3883_v23 = vld [vmem:[#allocation2 + $0x148] ss:$16 sps:$4 sm:$0xff]  }
  0x99   :  { %1791 = vmatpush2.bf16.msra.mxu0 %v3798_v25  ;;  %v3886_v25 = vld [vmem:[#allocation2 + $0x348] ss:$16 sps:$4 sm:$0xff]  }
  0x9a   :  { %1832 = vmatpush2.bf16.msra.mxu1 %v3801_v26  ;;  %1842 = vmatprep.subr.bf16.mxu0 %v3807_v27  ;;  %v3891_v26 = vld [vmem:[#allocation2 + $0x12c] ss:$16 sps:$4 sm:$0xff]  }
  0x9b   :  { %1883 = vmatprep.subr.bf16.mxu1 %v3810_v28  ;;  %v3894_v27 = vld [vmem:[#allocation2 + $0x32c] ss:$16 sps:$4 sm:$0xff]   ;;  %v3889_v28 = vld [vmem:[#allocation2 + $0x128] ss:$16 sps:$4 sm:$0xff]  }
  0x9c   :  { %1793 = vmatmul.mubr.bf16.vlgmr.msra.gmra.mxu0 %v4288_v63 }
  0x9d   :  { %1834 = vmatmul.mubr.bf16.vlgmr.msra.gmra.mxu1 %v4314_v29  ;;  %1843 = vmatpush1.bf16.msra.mxu0 %v3805_v30  ;;  %v3892_v30 = vld [vmem:[#allocation2 + $0x328] ss:$16 sps:$4 sm:$0xff]  }
  0x9e   :  { %1884 = vmatpush1.bf16.msra.mxu1 %v3808_v31  ;;  %1844 = vmatprep.subr.bf16.mxu0 %v3813_v32  ;;  %v3897_v31 = vld [vmem:[#allocation2 + $0x10c] ss:$16 sps:$4 sm:$0xff]  }
  0x9f   :  { %1885 = vmatprep.subr.bf16.mxu1 %v3816_v33  ;;  %1874 = vmatprep.mubr.bf16.mxu0 %v4286_v62  ;;  %v3832_v62 = vld [vmem:[#allocation2 + $0x268] ss:$16 sps:$4 sm:$0xff]   ;;  %v3900_v32 = vld [vmem:[#allocation2 + $0x30c] ss:$16 sps:$4 sm:$0xff]  }
  0xa0   :  { %1915 = vmatprep.mubr.bf16.mxu1 %v4292_v3  ;;  %v3837_v3 = vld [vmem:[#allocation2 + $0x4c] ss:$16 sps:$4 sm:$0xff]   ;;  %v3895_v33 = vld [vmem:[#allocation2 + $0x108] ss:$16 sps:$4 sm:$0xff]  }
  0xa1   :  { %1845 = vmatpush1.bf16.msra.mxu0 %v3811_v34  ;;  %v3898_v34 = vld [vmem:[#allocation2 + $0x308] ss:$16 sps:$4 sm:$0xff]  }
  0xa2   :  { %1886 = vmatpush1.bf16.msra.mxu1 %v3814_v35  ;;  %1846 = vmatprep.subr.bf16.mxu0 %v3819_v36  ;;  %v3903_v35 = vld [vmem:[#allocation2 + $0x4ec] ss:$16 sps:$4 sm:$0xff]  }
  0xa3   :  { %1887 = vmatprep.subr.bf16.mxu1 %v3822_v37  ;;  %v3906_v36 = vld [vmem:[#allocation2 + $0x6ec] ss:$16 sps:$4 sm:$0xff]   ;;  %v3901_v37 = vld [vmem:[#allocation2 + $0x4e8] ss:$16 sps:$4 sm:$0xff]  }
  0xa5   :  { %1847 = vmatpush1.bf16.msra.mxu0 %v3817_v38  ;;  %v3904_v38 = vld [vmem:[#allocation2 + $0x6e8] ss:$16 sps:$4 sm:$0xff]  }
  0xa6   :  { %1888 = vmatpush1.bf16.msra.mxu1 %v3820_v39  ;;  %1848 = vmatprep.subr.bf16.mxu0 %v3825_v40  ;;  %v3909_v39 = vld [vmem:[#allocation2 + $0x4cc] ss:$16 sps:$4 sm:$0xff]  }
  0xa7   :  { %1889 = vmatprep.subr.bf16.mxu1 %v3828_v41  ;;  %v3912_v40 = vld [vmem:[#allocation2 + $0x6cc] ss:$16 sps:$4 sm:$0xff]   ;;  %v3907_v41 = vld [vmem:[#allocation2 + $0x4c8] ss:$16 sps:$4 sm:$0xff]  }
  0xa9   :  { %1849 = vmatpush1.bf16.msra.mxu0 %v3823_v43  ;;  %v3910_v43 = vld [vmem:[#allocation2 + $0x6c8] ss:$16 sps:$4 sm:$0xff]  }
  0xaa   :  { %1890 = vmatpush1.bf16.msra.mxu1 %v3826_v44  ;;  %1850 = vmatprep.subr.bf16.mxu0 %v3831_v45  ;;  %v3915_v44 = vld [vmem:[#allocation2 + $0x4ac] ss:$16 sps:$4 sm:$0xff]  }
  0xab   :  { %1891 = vmatprep.subr.bf16.mxu1 %v3834_v46  ;;  %v3918_v45 = vld [vmem:[#allocation2 + $0x6ac] ss:$16 sps:$4 sm:$0xff]   ;;  %v3913_v46 = vld [vmem:[#allocation2 + $0x4a8] ss:$16 sps:$4 sm:$0xff]  }
  0xad   :  { %1851 = vmatpush1.bf16.msra.mxu0 %v3829_v47  ;;  %v3916_v47 = vld [vmem:[#allocation2 + $0x6a8] ss:$16 sps:$4 sm:$0xff]  }
  0xae   :  { %1892 = vmatpush1.bf16.msra.mxu1 %v3832_v62  ;;  %1852 = vmatprep.subr.bf16.mxu0 %v3837_v3  ;;  %v3921_v62 = vld [vmem:[#allocation2 + $0x48c] ss:$16 sps:$4 sm:$0xff]   ;;  %v3919_v3 = vld [vmem:[#allocation2 + $0x488] ss:$16 sps:$4 sm:$0xff]  }
  0xaf   :  { %1893 = vmatprep.subr.bf16.mxu1 %v3840_v48  ;;  %v3927_v48 = vld [vmem:[#allocation2 + $0x46c] ss:$16 sps:$4 sm:$0xff]  }
  0xb1   :  { %1853 = vmatpush1.bf16.msra.mxu0 %v3835_v49  ;;  %v3930_v49 = vld [vmem:[#allocation2 + $0x66c] ss:$16 sps:$4 sm:$0xff]  }
  0xb2   :  { %1894 = vmatpush1.bf16.msra.mxu1 %v3838_v50  ;;  %1854 = vmatprep.subr.bf16.mxu0 %v3843_v51  ;;  %v3925_v50 = vld [vmem:[#allocation2 + $0x468] ss:$16 sps:$4 sm:$0xff]  }
  0xb3   :  { %1895 = vmatprep.subr.bf16.mxu1 %v3846_v52  ;;  %v3928_v51 = vld [vmem:[#allocation2 + $0x668] ss:$16 sps:$4 sm:$0xff]   ;;  %v3933_v52 = vld [vmem:[#allocation2 + $0x44c] ss:$16 sps:$4 sm:$0xff]  }
  0xb5   :  { %1855 = vmatpush1.bf16.msra.mxu0 %v3841_v53  ;;  %v3934_v53 = vld [vmem:[#allocation2 + $0x648] ss:$16 sps:$4 sm:$0xff]  }
  0xb6   :  { %1896 = vmatpush1.bf16.msra.mxu1 %v3844_v54  ;;  %1856 = vmatprep.subr.bf16.mxu0 %v3849_v55  ;;  %v3939_v54 = vld [vmem:[#allocation2 + $0x42c] ss:$16 sps:$4 sm:$0xff]  }
  0xb7   :  { %1897 = vmatprep.subr.bf16.mxu1 %v3852_v56  ;;  %v3942_v55 = vld [vmem:[#allocation2 + $0x62c] ss:$16 sps:$4 sm:$0xff]   ;;  %v3937_v56 = vld [vmem:[#allocation2 + $0x428] ss:$16 sps:$4 sm:$0xff]  }
  0xb9   :  { %1857 = vmatpush1.bf16.msra.mxu0 %v3847_v57  ;;  %v3940_v57 = vld [vmem:[#allocation2 + $0x628] ss:$16 sps:$4 sm:$0xff]  }
  0xba   :  { %1898 = vmatpush1.bf16.msra.mxu1 %v3850_v58  ;;  %1858 = vmatprep.subr.bf16.mxu0 %v3855_v59  ;;  %v3945_v58 = vld [vmem:[#allocation2 + $0x40c] ss:$16 sps:$4 sm:$0xff]  }
  0xbb   :  { %1899 = vmatprep.subr.bf16.mxu1 %v3858_v60  ;;  %v3948_v59 = vld [vmem:[#allocation2 + $0x60c] ss:$16 sps:$4 sm:$0xff]   ;;  %v3943_v60 = vld [vmem:[#allocation2 + $0x408] ss:$16 sps:$4 sm:$0xff]  }
  0xbd   :  { %1859 = vmatpush2.bf16.msra.mxu0 %v3853_v61  ;;  %v3946_v61 = vld [vmem:[#allocation2 + $0x608] ss:$16 sps:$4 sm:$0xff]  }
  0xbe   :  { %1900 = vmatpush2.bf16.msra.mxu1 %v3856_v0  ;;  %1860 = vmatprep.subr.bf16.mxu0 %v3861_v1  ;;  %v3951_v0 = vld [vmem:[#allocation2 + $0x5ec] ss:$16 sps:$4 sm:$0xff]  }
  0xbf   :  { %1901 = vmatprep.subr.bf16.mxu1 %v3864_v2  ;;  %v3954_v1 = vld [vmem:[#allocation2 + $0x7ec] ss:$16 sps:$4 sm:$0xff]   ;;  %v3949_v2 = vld [vmem:[#allocation2 + $0x5e8] ss:$16 sps:$4 sm:$0xff]  }
  0xc1   :  { %1861 = vmatpush2.bf16.msra.mxu0 %v3859_v4  ;;  %v3952_v4 = vld [vmem:[#allocation2 + $0x7e8] ss:$16 sps:$4 sm:$0xff]  }
  0xc2   :  { %1902 = vmatpush2.bf16.msra.mxu1 %v3862_v5  ;;  %1862 = vmatprep.subr.bf16.mxu0 %v3867_v6  ;;  %v3957_v5 = vld [vmem:[#allocation2 + $0x5cc] ss:$16 sps:$4 sm:$0xff]  }
  0xc3   :  { %1903 = vmatprep.subr.bf16.mxu1 %v3870_v7  ;;  %v3960_v6 = vld [vmem:[#allocation2 + $0x7cc] ss:$16 sps:$4 sm:$0xff]   ;;  %v3955_v7 = vld [vmem:[#allocation2 + $0x5c8] ss:$16 sps:$4 sm:$0xff]  }
  0xc5   :  { %1863 = vmatpush2.bf16.msra.mxu0 %v3865_v8  ;;  %v3958_v8 = vld [vmem:[#allocation2 + $0x7c8] ss:$16 sps:$4 sm:$0xff]  }
  0xc6   :  { %1904 = vmatpush2.bf16.msra.mxu1 %v3868_v9  ;;  %1864 = vmatprep.subr.bf16.mxu0 %v3873_v10  ;;  %v3963_v9 = vld [vmem:[#allocation2 + $0x5ac] ss:$16 sps:$4 sm:$0xff]  }
  0xc7   :  { %1905 = vmatprep.subr.bf16.mxu1 %v3876_v11  ;;  %v3966_v10 = vld [vmem:[#allocation2 + $0x7ac] ss:$16 sps:$4 sm:$0xff]   ;;  %v3961_v11 = vld [vmem:[#allocation2 + $0x5a8] ss:$16 sps:$4 sm:$0xff]  }
  0xc9   :  { %1865 = vmatpush2.bf16.msra.mxu0 %v3871_v12  ;;  %v3964_v12 = vld [vmem:[#allocation2 + $0x7a8] ss:$16 sps:$4 sm:$0xff]  }
  0xca   :  { %1906 = vmatpush2.bf16.msra.mxu1 %v3874_v13  ;;  %1866 = vmatprep.subr.bf16.mxu0 %v3879_v15  ;;  %v3969_v13 = vld [vmem:[#allocation2 + $0x58c] ss:$16 sps:$4 sm:$0xff]  }
  0xcb   :  { %1907 = vmatprep.subr.bf16.mxu1 %v3882_v16  ;;  %v3972_v15 = vld [vmem:[#allocation2 + $0x78c] ss:$16 sps:$4 sm:$0xff]   ;;  %v3967_v16 = vld [vmem:[#allocation2 + $0x588] ss:$16 sps:$4 sm:$0xff]  }
  0xcd   :  { %1867 = vmatpush2.bf16.msra.mxu0 %v3877_v17  ;;  %v3970_v17 = vld [vmem:[#allocation2 + $0x788] ss:$16 sps:$4 sm:$0xff]  }
  0xce   :  { %1908 = vmatpush2.bf16.msra.mxu1 %v3880_v20  ;;  %1868 = vmatprep.subr.bf16.mxu0 %v3885_v21  ;;  %v3975_v20 = vld [vmem:[#allocation2 + $0x56c] ss:$16 sps:$4 sm:$0xff]  }
  0xcf   :  { %1909 = vmatprep.subr.bf16.mxu1 %v3888_v22  ;;  %v3978_v21 = vld [vmem:[#allocation2 + $0x76c] ss:$16 sps:$4 sm:$0xff]   ;;  %v3973_v22 = vld [vmem:[#allocation2 + $0x568] ss:$16 sps:$4 sm:$0xff]  }
  0xd1   :  { %1869 = vmatpush2.bf16.msra.mxu0 %v3883_v23  ;;  %v3976_v23 = vld [vmem:[#allocation2 + $0x768] ss:$16 sps:$4 sm:$0xff]  }
  0xd2   :  { %1910 = vmatpush2.bf16.msra.mxu1 %v3886_v25  ;;  %1870 = vmatprep.subr.bf16.mxu0 %v3891_v26  ;;  %v3981_v25 = vld [vmem:[#allocation2 + $0x54c] ss:$16 sps:$4 sm:$0xff]  }
  0xd3   :  { %1911 = vmatprep.subr.bf16.mxu1 %v3894_v27  ;;  %v3984_v26 = vld [vmem:[#allocation2 + $0x74c] ss:$16 sps:$4 sm:$0xff]   ;;  %v3979_v27 = vld [vmem:[#allocation2 + $0x548] ss:$16 sps:$4 sm:$0xff]  }
  0xd5   :  { %1871 = vmatpush2.bf16.msra.mxu0 %v3889_v28  ;;  %v3982_v28 = vld [vmem:[#allocation2 + $0x748] ss:$16 sps:$4 sm:$0xff]  }
  0xd6   :  { %1912 = vmatpush2.bf16.msra.mxu1 %v3892_v30  ;;  %1872 = vmatprep.subr.bf16.mxu0 %v3897_v31  ;;  %v3987_v30 = vld [vmem:[#allocation2 + $0x52c] ss:$16 sps:$4 sm:$0xff]  }
  0xd7   :  { %1913 = vmatprep.subr.bf16.mxu1 %v3900_v32  ;;  %v3990_v31 = vld [vmem:[#allocation2 + $0x72c] ss:$16 sps:$4 sm:$0xff]   ;;  %v3985_v32 = vld [vmem:[#allocation2 + $0x528] ss:$16 sps:$4 sm:$0xff]  }
  0xd9   :  { %1873 = vmatpush2.bf16.msra.mxu0 %v3895_v33  ;;  %v3988_v33 = vld [vmem:[#allocation2 + $0x728] ss:$16 sps:$4 sm:$0xff]  }
  0xda   :  { %1914 = vmatpush2.bf16.msra.mxu1 %v3898_v34  ;;  %1924 = vmatprep.subr.bf16.mxu0 %v3903_v35  ;;  %v3993_v34 = vld [vmem:[#allocation2 + $0x50c] ss:$16 sps:$4 sm:$0xff]  }
  0xdb   :  { %1965 = vmatprep.subr.bf16.mxu1 %v3906_v36  ;;  %v3996_v35 = vld [vmem:[#allocation2 + $0x70c] ss:$16 sps:$4 sm:$0xff]   ;;  %v3991_v36 = vld [vmem:[#allocation2 + $0x508] ss:$16 sps:$4 sm:$0xff]  }
  0xdc   :  { %1875 = vmatmul.mubr.bf16.vlgmr.msra.gmra.mxu0 %v4296_v14  ;;  %v3924_v14 = vld [vmem:[#allocation2 + $0x68c] ss:$16 sps:$4 sm:$0xff]  }
  0xdd   :  { %1916 = vmatmul.mubr.bf16.vlgmr.msra.gmra.mxu1 %v4302_v19  ;;  %1925 = vmatpush1.bf16.msra.mxu0 %v3901_v37  ;;  %v3922_v19 = vld [vmem:[#allocation2 + $0x688] ss:$16 sps:$4 sm:$0xff]  }
  0xde   :  { %1966 = vmatpush1.bf16.msra.mxu1 %v3904_v38  ;;  %1926 = vmatprep.subr.bf16.mxu0 %v3909_v39  ;;  %v3994_v37 = vld [vmem:[#allocation2 + $0x708] ss:$16 sps:$4 sm:$0xff]   ;;  %v3999_v38 = vld [vmem:[#allocation4 + $0xe4] ss:$16 sps:$4 sm:$0xff]   ;;  %v3997_v39 = vld [vmem:[#allocation4 + $0xe0] ss:$16 sps:$4 sm:$0xff]  }
  0xdf   :  { %1967 = vmatprep.subr.bf16.mxu1 %v3912_v40  ;;  %1956 = vmatprep.mubr.bf16.mxu0 %v4298_v18  ;;  %v3936_v18 = vld [vmem:[#allocation2 + $0x64c] ss:$16 sps:$4 sm:$0xff]   ;;  %v4002_v40 = vld [vmem:[#allocation4 + $0xc4] ss:$16 sps:$4 sm:$0xff]  }
  0xe0   :  { %1997 = vmatprep.mubr.bf16.mxu1 %v4306_v24  ;;  %v3931_v24 = vld [vmem:[#allocation2 + $0x448] ss:$16 sps:$4 sm:$0xff]  }
  0xe1   :  { %1927 = vmatpush1.bf16.msra.mxu0 %v3907_v41 }
  0xe2   :  { %1968 = vmatpush1.bf16.msra.mxu1 %v3910_v43  ;;  %1928 = vmatprep.subr.bf16.mxu0 %v3915_v44  ;;  %v4000_v44 = vld [vmem:[#allocation4 + $0xc0] ss:$16 sps:$4 sm:$0xff]  }
  0xe3   :  { %1969 = vmatprep.subr.bf16.mxu1 %v3918_v45 }
  0xe5   :  { %1929 = vmatpush1.bf16.msra.mxu0 %v3913_v46 }
  0xe6   :  { %1970 = vmatpush1.bf16.msra.mxu1 %v3916_v47  ;;  %1930 = vmatprep.subr.bf16.mxu0 %v3921_v62  ;;  %v4005_v47 = vld [vmem:[#allocation4 + $0xa4] ss:$16 sps:$4 sm:$0xff]  }
  0xe7   :  { %1971 = vmatprep.subr.bf16.mxu1 %v3924_v14 }
  0xe9   :  { %1931 = vmatpush1.bf16.msra.mxu0 %v3919_v3  ;;  %v4003_v3 = vld [vmem:[#allocation4 + $0xa0] ss:$16 sps:$4 sm:$0xff]  }
  0xea   :  { %1972 = vmatpush1.bf16.msra.mxu1 %v3922_v19  ;;  %1932 = vmatprep.subr.bf16.mxu0 %v3927_v48 }
  0xeb   :  { %1973 = vmatprep.subr.bf16.mxu1 %v3930_v49  ;;  %v4008_v49 = vld [vmem:[#allocation4 + $0x84] ss:$16 sps:$4 sm:$0xff]  }
  0xed   :  { %1933 = vmatpush1.bf16.msra.mxu0 %v3925_v50  ;;  %v4045_v50 = vld [vmem:[#allocation4 + $0x2e0] ss:$16 sps:$4 sm:$0xff]  }
  0xee   :  { %1974 = vmatpush1.bf16.msra.mxu1 %v3928_v51  ;;  %1934 = vmatprep.subr.bf16.mxu0 %v3933_v52  ;;  %v4053_v51 = vld [vmem:[#allocation4 + $0x2c4] ss:$16 sps:$4 sm:$0xff]   ;;  %v4051_v52 = vld [vmem:[#allocation4 + $0x2c0] ss:$16 sps:$4 sm:$0xff]  }
  0xef   :  { %1975 = vmatprep.subr.bf16.mxu1 %v3936_v18  ;;  %v4011_v18 = vld [vmem:[#allocation4 + $0x64] ss:$16 sps:$4 sm:$0xff]  }
  0xf1   :  { %1935 = vmatpush1.bf16.msra.mxu0 %v3931_v24  ;;  %v4059_v24 = vld [vmem:[#allocation4 + $0x2a4] ss:$16 sps:$4 sm:$0xff]  }
  0xf2   :  { %1976 = vmatpush1.bf16.msra.mxu1 %v3934_v53  ;;  %1936 = vmatprep.subr.bf16.mxu0 %v3939_v54  ;;  %v4009_v53 = vld [vmem:[#allocation4 + $0x60] ss:$16 sps:$4 sm:$0xff]  }
  0xf3   :  { %1977 = vmatprep.subr.bf16.mxu1 %v3942_v55  ;;  %v4057_v54 = vld [vmem:[#allocation4 + $0x2a0] ss:$16 sps:$4 sm:$0xff]   ;;  %v4014_v55 = vld [vmem:[#allocation4 + $0x44] ss:$16 sps:$4 sm:$0xff]  }
  0xf5   :  { %1937 = vmatpush1.bf16.msra.mxu0 %v3937_v56  ;;  %v4065_v56 = vld [vmem:[#allocation4 + $0x284] ss:$16 sps:$4 sm:$0xff]  }
  0xf6   :  { %1978 = vmatpush1.bf16.msra.mxu1 %v3940_v57  ;;  %1938 = vmatprep.subr.bf16.mxu0 %v3945_v58  ;;  %v4012_v57 = vld [vmem:[#allocation4 + $0x40] ss:$16 sps:$4 sm:$0xff]  }
  0xf7   :  { %1979 = vmatprep.subr.bf16.mxu1 %v3948_v59  ;;  %v4063_v58 = vld [vmem:[#allocation4 + $0x280] ss:$16 sps:$4 sm:$0xff]   ;;  %v4017_v59 = vld [vmem:[#allocation4 + $0x24] ss:$16 sps:$4 sm:$0xff]  }
  0xf9   :  { %1939 = vmatpush1.bf16.msra.mxu0 %v3943_v60  ;;  %v4071_v60 = vld [vmem:[#allocation4 + $0x264] ss:$16 sps:$4 sm:$0xff]  }
  0xfa   :  { %1980 = vmatpush1.bf16.msra.mxu1 %v3946_v61  ;;  %1940 = vmatprep.subr.bf16.mxu0 %v3951_v0  ;;  %v4015_v61 = vld [vmem:[#allocation4 + $0x20] ss:$16 sps:$4 sm:$0xff]  }
  0xfb   :  { %1981 = vmatprep.subr.bf16.mxu1 %v3954_v1  ;;  %v4069_v0 = vld [vmem:[#allocation4 + $0x260] ss:$16 sps:$4 sm:$0xff]   ;;  %v4020_v1 = vld [vmem:[#allocation4 + $0x4] ss:$16 sps:$4 sm:$0xff]  }
  0xfd   :  { %1941 = vmatpush2.bf16.msra.mxu0 %v3949_v2  ;;  %v4077_v2 = vld [vmem:[#allocation4 + $0x244] ss:$16 sps:$4 sm:$0xff]  }
  0xfe   :  { %1982 = vmatpush2.bf16.msra.mxu1 %v3952_v4  ;;  %1942 = vmatprep.subr.bf16.mxu0 %v3957_v5  ;;  %v4018_v4 = vld [vmem:[#allocation4] ss:$16 sps:$4 sm:$0xff]  }
  0xff   :  { %1983 = vmatprep.subr.bf16.mxu1 %v3960_v6  ;;  %v4075_v5 = vld [vmem:[#allocation4 + $0x240] ss:$16 sps:$4 sm:$0xff]   ;;  %v4023_v6 = vld [vmem:[#allocation4 + $0x1e4] ss:$16 sps:$4 sm:$0xff]  }
 0x101   :  { %1943 = vmatpush2.bf16.msra.mxu0 %v3955_v7  ;;  %v4083_v7 = vld [vmem:[#allocation4 + $0x224] ss:$16 sps:$4 sm:$0xff]  }
 0x102   :  { %1984 = vmatpush2.bf16.msra.mxu1 %v3958_v8  ;;  %1944 = vmatprep.subr.bf16.mxu0 %v3963_v9  ;;  %v4021_v8 = vld [vmem:[#allocation4 + $0x1e0] ss:$16 sps:$4 sm:$0xff]  }
 0x103   :  { %1985 = vmatprep.subr.bf16.mxu1 %v3966_v10  ;;  %v4081_v9 = vld [vmem:[#allocation4 + $0x220] ss:$16 sps:$4 sm:$0xff]   ;;  %v4026_v10 = vld [vmem:[#allocation4 + $0x1c4] ss:$16 sps:$4 sm:$0xff]  }
 0x105   :  { %1945 = vmatpush2.bf16.msra.mxu0 %v3961_v11  ;;  %v4024_v11 = vld [vmem:[#allocation4 + $0x1c0] ss:$16 sps:$4 sm:$0xff]  }
 0x106   :  { %1986 = vmatpush2.bf16.msra.mxu1 %v3964_v12  ;;  %1946 = vmatprep.subr.bf16.mxu0 %v3969_v13  ;;  %v4029_v12 = vld [vmem:[#allocation4 + $0x1a4] ss:$16 sps:$4 sm:$0xff]   ;;  %v4027_v13 = vld [vmem:[#allocation4 + $0x1a0] ss:$16 sps:$4 sm:$0xff]  }
 0x107   :  { %1987 = vmatprep.subr.bf16.mxu1 %v3972_v15  ;;  %v4032_v15 = vld [vmem:[#allocation4 + $0x184] ss:$16 sps:$4 sm:$0xff]  }
 0x109   :  { %1947 = vmatpush2.bf16.msra.mxu0 %v3967_v16  ;;  %v4030_v16 = vld [vmem:[#allocation4 + $0x180] ss:$16 sps:$4 sm:$0xff]  }
 0x10a   :  { %1988 = vmatpush2.bf16.msra.mxu1 %v3970_v17  ;;  %1948 = vmatprep.subr.bf16.mxu0 %v3975_v20  ;;  %v4035_v17 = vld [vmem:[#allocation4 + $0x164] ss:$16 sps:$4 sm:$0xff]   ;;  %v4033_v20 = vld [vmem:[#allocation4 + $0x160] ss:$16 sps:$4 sm:$0xff]  }
 0x10b   :  { %1989 = vmatprep.subr.bf16.mxu1 %v3978_v21  ;;  %v4038_v21 = vld [vmem:[#allocation4 + $0x144] ss:$16 sps:$4 sm:$0xff]  }
 0x10d   :  { %1949 = vmatpush2.bf16.msra.mxu0 %v3973_v22  ;;  %v4036_v22 = vld [vmem:[#allocation4 + $0x140] ss:$16 sps:$4 sm:$0xff]  }
 0x10e   :  { %1990 = vmatpush2.bf16.msra.mxu1 %v3976_v23  ;;  %1950 = vmatprep.subr.bf16.mxu0 %v3981_v25  ;;  %v4041_v23 = vld [vmem:[#allocation4 + $0x124] ss:$16 sps:$4 sm:$0xff]   ;;  %v322_v25 = vsub.s32 0, %v4280_v42 }
 0x10f   :  { %1991 = vmatprep.subr.bf16.mxu1 %v3984_v26  ;;  %v4338_v26 = vld [vmem:[%s4474_s2] sm:$0xf] }
 0x111   :  { %1951 = vmatpush2.bf16.msra.mxu0 %v3979_v27  ;;  %v326_v27 = vsub.s32 1, %v4280_v42 }
 0x112   :  { %1992 = vmatpush2.bf16.msra.mxu1 %v3982_v28  ;;  %1952 = vmatprep.subr.bf16.mxu0 %v3987_v30  ;;  %v4039_v28 = vld [vmem:[#allocation4 + $0x120] ss:$16 sps:$4 sm:$0xff]   ;;  %v4044_v30 = vld [vmem:[#allocation4 + $0x104] ss:$16 sps:$4 sm:$0xff]  }
 0x113   :  { %1993 = vmatprep.subr.bf16.mxu1 %v3990_v31  ;;  %v323_v31 = vrot.slane %v4338_v26, %v322_v25 }
 0x115   :  { %1953 = vmatpush2.bf16.msra.mxu0 %v3985_v32  ;;  %v327_v32 = vrot.slane %v4338_v26, %v326_v27 }
 0x116   :  { %1994 = vmatpush2.bf16.msra.mxu1 %v3988_v33  ;;  %1954 = vmatprep.subr.bf16.mxu0 %v3993_v34  ;;  %v4042_v33 = vld [vmem:[#allocation4 + $0x100] ss:$16 sps:$4 sm:$0xff]   ;;  %v4050_v34 = vld [vmem:[#allocation4 + $0x2ec] ss:$16 sps:$4 sm:$0xff]  }
 0x117   :  { %1995 = vmatprep.subr.bf16.mxu1 %v3996_v35 }
 0x119   :  { %1955 = vmatpush2.bf16.msra.mxu0 %v3991_v36 }
 0x11a   :  { %1996 = vmatpush2.bf16.msra.mxu1 %v3994_v37  ;;  %2641 = vmatprep.subr.bf16.mxu0 %v3999_v38 }
 0x11c   :  { %v4324_v41 = vpop.f32.mrf.mxu0  ;;  %1957 = vmatmul.mubr.bf16.vlgmr.msra.gmra.mxu0 %v4288_v63  ;;  %v4047_v63 = vld [vmem:[#allocation4 + $0x2e4] ss:$16 sps:$4 sm:$0xff]  }
 0x11d   :  { %v4326_v43 = vpop.f32.mrf.mxu1  ;;  %1998 = vmatmul.mubr.bf16.vlgmr.msra.gmra.mxu1 %v4314_v29  ;;  %2642 = vmatpush1.bf16.msra.mxu0 %v3997_v39  ;;  %v4006_v29 = vld [vmem:[#allocation4 + $0x80] ss:$16 sps:$4 sm:$0xff]   ;;  %v1713_v35 = vadd.f32 %v4324_v41, %v323_v31  ;;  %v334_v31 = vsub.s32 3, %v4280_v42 }
 0x11e   :  { %v4330_v45 = vpop.f32.mrf.mxu0  ;;  %2643 = vmatprep.subr.bf16.mxu0 %v4002_v40  ;;  %2682 = vmatprep.subr.bf16.mxu1 %v4047_v63 }
 0x11f   :  { %v4332_v46 = vpop.f32.mrf.mxu1  ;;  %2683 = vmatpush1.bf16.msra.mxu1 %v4045_v50  ;;  %v1715_v36 = vadd.f32 %v4330_v45, %v327_v32  ;;  %v1754_v37 = vadd.f32 %v4326_v43, %v1713_v35  ;;  %v2110_v45 = vld [vmem:[#allocation4 + $0x300] sm:$0xff] }
 0x120   :  { %v1716_v62 = vpop.f32.mrf.mxu0  ;;  %2684 = vmatprep.subr.bf16.mxu1 %v4053_v51  ;;  %v3533_v63 = vcombine.high %v2110_v45, %v2110_v45  ;;  %v3532_v51 = vcombine.low %v2110_v45, %v2110_v45 }
 0x121   :  { %v1757_v14 = vpop.f32.mrf.mxu1  ;;  %2644 = vmatpush1.bf16.msra.mxu0 %v4000_v44  ;;  %v1756_v40 = vadd.f32 %v4332_v46, %v1715_v36 }
 0x122   :  { %v1717_v19 = vpop.f32.mrf.mxu0  ;;  %2645 = vmatprep.subr.bf16.mxu0 %v4005_v47  ;;  %v4089_v47 = vld [vmem:[#allocation4 + $0x204] ss:$16 sps:$4 sm:$0xff]  }
 0x123   :  { %v1758_v48 = vpop.f32.mrf.mxu1  ;;  %2685 = vmatpush1.bf16.msra.mxu1 %v4051_v52 }
 0x124   :  { %2686 = vmatprep.subr.bf16.mxu1 %v4059_v24 }
 0x125   :  { %2646 = vmatpush1.bf16.msra.mxu0 %v4003_v3  ;;  %v4087_v3 = vld [vmem:[#allocation4 + $0x200] ss:$16 sps:$4 sm:$0xff]  }
 0x126   :  { %2647 = vmatprep.subr.bf16.mxu0 %v4008_v49 }
 0x127   :  { %2687 = vmatpush1.bf16.msra.mxu1 %v4057_v54  ;;  %v4099_v54 = vld [vmem:[#allocation4 + $0xec] ss:$16 sps:$4 sm:$0xff]  }
 0x128   :  { %2688 = vmatprep.subr.bf16.mxu1 %v4065_v56  ;;  %v4056_v56 = vld [vmem:[#allocation4 + $0x2cc] ss:$16 sps:$4 sm:$0xff]  }
 0x129   :  { %2648 = vmatpush1.bf16.msra.mxu0 %v4006_v29 }
 0x12a   :  { %2649 = vmatprep.subr.bf16.mxu0 %v4011_v18  ;;  %v2630_v18 = vsel %vm2628_vm0, %v3532_v51, 0 }
 0x12b   :  { %2689 = vmatpush1.bf16.msra.mxu1 %v4063_v58  ;;  %v4062_v58 = vld [vmem:[#allocation4 + $0x2ac] ss:$16 sps:$4 sm:$0xff]  }
 0x12c   :  { %2690 = vmatprep.subr.bf16.mxu1 %v4071_v60  ;;  %v4068_v60 = vld [vmem:[#allocation4 + $0x28c] ss:$16 sps:$4 sm:$0xff]  }
 0x12d   :  { %2650 = vmatpush1.bf16.msra.mxu0 %v4009_v53  ;;  %v4048_v53 = vld [vmem:[#allocation4 + $0x2e8] ss:$16 sps:$4 sm:$0xff]  }
 0x12e   :  { %2651 = vmatprep.subr.bf16.mxu0 %v4014_v55 }
 0x12f   :  { %2691 = vmatpush1.bf16.msra.mxu1 %v4069_v0  ;;  %v4074_v0 = vld [vmem:[#allocation4 + $0x26c] ss:$16 sps:$4 sm:$0xff]  }
 0x130   :  { %2692 = vmatprep.subr.bf16.mxu1 %v4077_v2  ;;  %v4080_v2 = vld [vmem:[#allocation4 + $0x24c] ss:$16 sps:$4 sm:$0xff]  }
 0x131   :  { %2652 = vmatpush1.bf16.msra.mxu0 %v4012_v57  ;;  %v4054_v57 = vld [vmem:[#allocation4 + $0x2c8] ss:$16 sps:$4 sm:$0xff]  }
 0x132   :  { %2653 = vmatprep.subr.bf16.mxu0 %v4017_v59  ;;  %v4060_v59 = vld [vmem:[#allocation4 + $0x2a8] ss:$16 sps:$4 sm:$0xff]  }
 0x133   :  { %2693 = vmatpush1.bf16.msra.mxu1 %v4075_v5  ;;  %v4086_v5 = vld [vmem:[#allocation4 + $0x22c] ss:$16 sps:$4 sm:$0xff]  }
 0x134   :  { %2694 = vmatprep.subr.bf16.mxu1 %v4083_v7  ;;  %v4092_v7 = vld [vmem:[#allocation4 + $0x20c] ss:$16 sps:$4 sm:$0xff]  }
 0x135   :  { %2654 = vmatpush1.bf16.msra.mxu0 %v4015_v61  ;;  %v4066_v61 = vld [vmem:[#allocation4 + $0x288] ss:$16 sps:$4 sm:$0xff]  }
 0x136   :  { %2655 = vmatprep.subr.bf16.mxu0 %v4020_v1  ;;  %v4072_v1 = vld [vmem:[#allocation4 + $0x268] ss:$16 sps:$4 sm:$0xff]  }
 0x137   :  { %2695 = vmatpush1.bf16.msra.mxu1 %v4081_v9  ;;  %v4090_v9 = vld [vmem:[#allocation4 + $0x208] ss:$16 sps:$4 sm:$0xff]  }
 0x138   :  { %2696 = vmatprep.subr.bf16.mxu1 %v4089_v47 }
 0x139   :  { %2656 = vmatpush1.bf16.msra.mxu0 %v4018_v4  ;;  %v4078_v4 = vld [vmem:[#allocation4 + $0x248] ss:$16 sps:$4 sm:$0xff]  }
 0x13a   :  { %2657 = vmatprep.subr.bf16.mxu0 %v4023_v6  ;;  %v4084_v6 = vld [vmem:[#allocation4 + $0x228] ss:$16 sps:$4 sm:$0xff]  }
 0x13b   :  { %2697 = vmatpush1.bf16.msra.mxu1 %v4087_v3 }
 0x13c   :  { %3536 = vmatprep.subr.msk.bf16.mxu1 %vm2628_vm0, %v3533_v63  ;;  %v4097_v63 = vld [vmem:[#allocation4 + $0xe8] ss:$16 sps:$4 sm:$0xff]  }
 0x13d   :  { %2658 = vmatpush2.bf16.msra.mxu0 %v4021_v8  ;;  %v2111_v8 = vld [vmem:[#allocation4 + $0x308] sm:$0xff] }
 0x13e   :  { %2659 = vmatprep.subr.bf16.mxu0 %v4026_v10  ;;  %v3535_v10 = vcombine.high %v2111_v8, %v2111_v8 }
 0x13f   :  { %2713 = vmatpush2.bf16.msra.mxu1 %v2630_v18  ;;  %v4105_v18 = vld [vmem:[#allocation4 + $0xac] ss:$16 sps:$4 sm:$0xff]  }
 0x140   :  { %2723 = vmatprep.subr.bf16.mxu1 %v4099_v54  ;;  %v4149_v54 = vld [vmem:[%s4477_s5 + $0x68] sm:$0xff]  }
 0x141   :  { %2660 = vmatpush2.bf16.msra.mxu0 %v4024_v11  ;;  %v3534_v11 = vcombine.low %v2111_v8, %v2111_v8  ;;  %v4156_v8 = vld [vmem:[%s4477_s5 + $0x10] sm:$0xff]  }
 0x142   :  { %2661 = vmatprep.subr.bf16.mxu0 %v4029_v12 }
 0x143   :  { %v2636_v12 = vsel %vm2628_vm0, %v3534_v11, 0  ;;  %v4118_v11 = vld [vmem:[#allocation4 + $0x8] ss:$16 sps:$4 sm:$0xff]  }
 0x145   :  { %2662 = vmatpush2.bf16.msra.mxu0 %v4027_v13 }
 0x146   :  { %2663 = vmatprep.subr.bf16.mxu0 %v4032_v15 }
 0x149   :  { %2664 = vmatpush2.bf16.msra.mxu0 %v4030_v16 }
 0x14a   :  { %2665 = vmatprep.subr.bf16.mxu0 %v4035_v17 }
 0x14d   :  { %2666 = vmatpush2.bf16.msra.mxu0 %v4033_v20 }
 0x14e   :  { %2667 = vmatprep.subr.bf16.mxu0 %v4038_v21 }
 0x151   :  { %2668 = vmatpush2.bf16.msra.mxu0 %v4036_v22 }
 0x152   :  { %2669 = vmatprep.subr.bf16.mxu0 %v4041_v23 }
 0x155   :  { %2670 = vmatpush2.bf16.msra.mxu0 %v4039_v28  ;;  %v4145_v28 = vld [vmem:[%s4477_s5 + $0x78] sm:$0xff]  }
 0x156   :  { %2671 = vmatprep.subr.bf16.mxu0 %v4044_v30  ;;  %v330_v30 = vsub.s32 2, %v4280_v42  ;;  %v4170_v42 = vld [vmem:[%s4479_s7 + $0x8] sm:$0xff]  }
 0x158   :  { %v331_v32 = vrot.slane %v4338_v26, %v330_v30 }
 0x159   :  { %2672 = vmatpush2.bf16.msra.mxu0 %v4042_v33  ;;  %v335_v33 = vrot.slane %v4338_v26, %v334_v31 }
 0x15a   :  { %2764 = vmatprep.subr.bf16.mxu0 %v4050_v34 }
 0x15c   :  { %v1794_v38 = vpop.f32.mrf.mxu0 }
 0x15d   :  { %v1835_v39 = vpop.f32.mrf.mxu1  ;;  %v1795_v44 = vadd.f32 %v1794_v38, %v1754_v37 }
 0x15e   :  { %v1796_v62 = vpop.f32.mrf.mxu0 }
 0x15f   :  { %v1837_v14 = vpop.f32.mrf.mxu1  ;;  %v1836_v19 = vadd.f32 %v1835_v39, %v1795_v44  ;;  %v1797_v48 = vadd.f32 %v1796_v62, %v1756_v40 }
 0x160   :  { %v1798_v49 = vpop.f32.mrf.mxu0 }
 0x161   :  { %v1839_v41 = vpop.f32.mrf.mxu1  ;;  %v1838_v50 = vadd.f32 %v1837_v14, %v1797_v48  ;;  %v2006_v43 = vmax.f32 %v1836_v19, 0.0 }
 0x162   :  { %v1799_v29 = vpop.f32.mrf.mxu0 }
 0x163   :  { %v1840_v52 = vpop.f32.mrf.mxu1  ;;  %v2007_v46 = vmax.f32 %v1838_v50, 0.0  ;;  %v4355_v55 = vpack.c.bf16 %v2006_v43, %v2006_v43  ;;  %v4102_v43 = vld [vmem:[#allocation4 + $0xcc] ss:$16 sps:$4 sm:$0xff]  }
 0x164   :  { %v4146_v29 = vld [vmem:[%s4477_s5 + $0x38] sm:$0xff]   ;;  %v4147_v52 = vld [vmem:[%s4477_s5 + $0x70] sm:$0xff]  }
 0x165   :  { %v4353_v24 = vpack.c.bf16 %v2007_v46, %v2007_v46  ;;  %v4100_v46 = vld [vmem:[#allocation4 + $0xc8] ss:$16 sps:$4 sm:$0xff]  }
 0x167   :  { %2673 = vmatprep.mubr.bf16.mxu0 %v4353_v24 }
 0x168   :  { %2674 = vmatmul.mubr.bf16.vlgmr.msra.gmra.mxu0 %v4355_v55 }
 0x169   :  { %2765 = vmatpush1.bf16.msra.mxu0 %v4048_v53  ;;  %v4148_v53 = vld [vmem:[%s4477_s5 + $0x30] sm:$0xff]  }
 0x16a   :  { %2766 = vmatprep.subr.bf16.mxu0 %v4056_v56  ;;  %v4103_v56 = vld [vmem:[#allocation4 + $0xa8] ss:$16 sps:$4 sm:$0xff]  }
 0x16d   :  { %2767 = vmatpush1.bf16.msra.mxu0 %v4054_v57  ;;  %v4108_v57 = vld [vmem:[#allocation4 + $0x8c] ss:$16 sps:$4 sm:$0xff]  }
 0x16e   :  { %2768 = vmatprep.subr.bf16.mxu0 %v4062_v58  ;;  %v4151_v58 = vld [vmem:[%s4477_s5 + $0x60] sm:$0xff]  }
 0x171   :  { %2769 = vmatpush1.bf16.msra.mxu0 %v4060_v59  ;;  %v4106_v59 = vld [vmem:[#allocation4 + $0x88] ss:$16 sps:$4 sm:$0xff]  }
 0x172   :  { %2770 = vmatprep.subr.bf16.mxu0 %v4068_v60  ;;  %v4111_v60 = vld [vmem:[#allocation4 + $0x6c] ss:$16 sps:$4 sm:$0xff]  }
 0x175   :  { %2771 = vmatpush1.bf16.msra.mxu0 %v4066_v61  ;;  %v4152_v61 = vld [vmem:[%s4477_s5 + $0x20] sm:$0xff]  }
 0x176   :  { %2772 = vmatprep.subr.bf16.mxu0 %v4074_v0  ;;  %v4153_v0 = vld [vmem:[%s4477_s5 + $0x58] sm:$0xff]  }
 0x179   :  { %2773 = vmatpush1.bf16.msra.mxu0 %v4072_v1  ;;  %v4109_v1 = vld [vmem:[#allocation4 + $0x68] ss:$16 sps:$4 sm:$0xff]  }
 0x17a   :  { %2774 = vmatprep.subr.bf16.mxu0 %v4080_v2  ;;  %v4114_v2 = vld [vmem:[#allocation4 + $0x4c] ss:$16 sps:$4 sm:$0xff]  }
 0x17d   :  { %2775 = vmatpush1.bf16.msra.mxu0 %v4078_v4  ;;  %v4154_v4 = vld [vmem:[%s4477_s5 + $0x18] sm:$0xff]  }
 0x17e   :  { %2776 = vmatprep.subr.bf16.mxu0 %v4086_v5  ;;  %v4155_v5 = vld [vmem:[%s4477_s5 + $0x50] sm:$0xff]  }
 0x181   :  { %2777 = vmatpush1.bf16.msra.mxu0 %v4084_v6  ;;  %v4112_v6 = vld [vmem:[#allocation4 + $0x48] ss:$16 sps:$4 sm:$0xff]  }
 0x182   :  { %2778 = vmatprep.subr.bf16.mxu0 %v4092_v7  ;;  %v4117_v7 = vld [vmem:[#allocation4 + $0x2c] ss:$16 sps:$4 sm:$0xff]  }
 0x185   :  { %2779 = vmatpush1.bf16.msra.mxu0 %v4090_v9  ;;  %v4115_v9 = vld [vmem:[#allocation4 + $0x28] ss:$16 sps:$4 sm:$0xff]  }
 0x186   :  { %3538 = vmatprep.subr.msk.bf16.mxu0 %vm2628_vm0, %v3535_v10  ;;  %v4120_v10 = vld [vmem:[#allocation4 + $0xc] ss:$16 sps:$4 sm:$0xff]  }
 0x189   :  { %2795 = vmatpush2.bf16.msra.mxu0 %v2636_v12  ;;  %v4123_v12 = vld [vmem:[#allocation4 + $0x1ec] ss:$16 sps:$4 sm:$0xff]  }
 0x18a   :  { %3571 = vmatprep.subr.bf16.mxu0 %v4145_v28  ;;  %v4133_v28 = vld [vmem:[#allocation4 + $0x168] ss:$16 sps:$4 sm:$0xff]  }
 0x19c   :  { %v1876_v13 = vpop.f32.mrf.mxu0 }
 0x19d   :  { %v1917_v15 = vpop.f32.mrf.mxu1  ;;  %v1877_v34 = vadd.f32 %v1876_v13, %v331_v32  ;;  %v4121_v13 = vld [vmem:[#allocation4 + $0x1e8] ss:$16 sps:$4 sm:$0xff]   ;;  %v4138_v32 = vld [vmem:[#allocation4 + $0x14c] ss:$16 sps:$4 sm:$0xff]  }
 0x19e   :  { %v1878_v16 = vpop.f32.mrf.mxu0 }
 0x19f   :  { %v1919_v17 = vpop.f32.mrf.mxu1  ;;  %v1879_v35 = vadd.f32 %v1878_v16, %v335_v33  ;;  %v1918_v36 = vadd.f32 %v1917_v15, %v1877_v34  ;;  %v4126_v15 = vld [vmem:[#allocation4 + $0x1cc] ss:$16 sps:$4 sm:$0xff]   ;;  %v4124_v16 = vld [vmem:[#allocation4 + $0x1c8] ss:$16 sps:$4 sm:$0xff]  }
 0x1a0   :  { %v1880_v20 = vpop.f32.mrf.mxu0  ;;  %v4136_v33 = vld [vmem:[#allocation4 + $0x148] ss:$16 sps:$4 sm:$0xff]   ;;  %v4141_v34 = vld [vmem:[#allocation4 + $0x12c] ss:$16 sps:$4 sm:$0xff]  }
 0x1a1   :  { %v1921_v21 = vpop.f32.mrf.mxu1  ;;  %v1920_v39 = vadd.f32 %v1919_v17, %v1879_v35  ;;  %v4129_v17 = vld [vmem:[#allocation4 + $0x1ac] ss:$16 sps:$4 sm:$0xff]   ;;  %v4127_v20 = vld [vmem:[#allocation4 + $0x1a8] ss:$16 sps:$4 sm:$0xff]  }
 0x1a2   :  { %v1881_v22 = vpop.f32.mrf.mxu0  ;;  %v4132_v21 = vld [vmem:[#allocation4 + $0x18c] ss:$16 sps:$4 sm:$0xff]   ;;  %v4139_v35 = vld [vmem:[#allocation4 + $0x128] ss:$16 sps:$4 sm:$0xff]  }
 0x1a3   :  { %v1922_v23 = vpop.f32.mrf.mxu1  ;;  %v4130_v22 = vld [vmem:[#allocation4 + $0x188] ss:$16 sps:$4 sm:$0xff]  }
 0x1a4   :  { %v4135_v23 = vld [vmem:[#allocation4 + $0x16c] ss:$16 sps:$4 sm:$0xff]  }
 0x1dc   :  { %v1958_v37 = vpop.f32.mrf.mxu0 }
 0x1dd   :  { %v1999_v38 = vpop.f32.mrf.mxu1  ;;  %v1959_v40 = vadd.f32 %v1958_v37, %v1918_v36  ;;  %v4144_v36 = vld [vmem:[#allocation4 + $0x10c] ss:$16 sps:$4 sm:$0xff]   ;;  %v4142_v37 = vld [vmem:[#allocation4 + $0x108] ss:$16 sps:$4 sm:$0xff]  }
 0x1de   :  { %v1960_v44 = vpop.f32.mrf.mxu0 }
 0x1df   :  { %v2001_v47 = vpop.f32.mrf.mxu1  ;;  %v2000_v62 = vadd.f32 %v1999_v38, %v1959_v40  ;;  %v1961_v14 = vadd.f32 %v1960_v44, %v1920_v39  ;;  %v4157_v39 = vld [vmem:[%s4477_s5 + $0x48] sm:$0xff]  }
 0x1e0   :  { %v1962_v3 = vpop.f32.mrf.mxu0  ;;  %v4158_v44 = vld [vmem:[%s4477_s5 + $0x8] sm:$0xff]  }
 0x1e1   :  { %v2003_v19 = vpop.f32.mrf.mxu1  ;;  %v2002_v48 = vadd.f32 %v2001_v47, %v1961_v14  ;;  %v2008_v49 = vmax.f32 %v2000_v62, 0.0  ;;  %v4159_v62 = vld [vmem:[%s4477_s5 + $0x40] sm:$0xff]   ;;  %v4161_v3 = vld [vmem:[%s4477_s5 + $0xb8] sm:$0xff]  }
 0x1e2   :  { %v1963_v41 = vpop.f32.mrf.mxu0  ;;  %v4221_v19 = vmov 0  }
 0x1e3   :  { %v2004_v45 = vpop.f32.mrf.mxu1  ;;  %v2009_v50 = vmax.f32 %v2002_v48, 0.0  ;;  %v2012_v51 = vpack.c.bf16 %v2008_v49, %v2008_v49  ;;  %v4162_v48 = vld [vmem:[%s4477_s5 + $0xb0] sm:$0xff]   ;;  %v4163_v49 = vld [vmem:[%s4477_s5 + $0xa8] sm:$0xff]   ;;  %v4164_v41 = vld [vmem:[%s4477_s5 + $0xa0] sm:$0xff]  }
 0x1e4   :  { %v4165_v45 = vld [vmem:[%s4477_s5 + $0x98] sm:$0xff]  }
 0x1e5   :  { %v2013_v26 = vpack.c.bf16 %v2009_v50, %v2009_v50  ;;  %v4166_v50 = vld [vmem:[%s4477_s5 + $0x90] sm:$0xff]  }
 0x1e7   :  { %3537 = vmatprep.mubr.msk.bf16.mxu1 %vm2624_vm1, %v2013_v26  ;;  %3539 = vmatprep.mubr.msk.bf16.mxu0 %vm2624_vm1, %v2013_v26  ;;  %v4167_v26 = vld [vmem:[%s4477_s5 + $0x88] sm:$0xff]  }
 0x1e8   :  { %2715 = vmatmul.mubr.bf16.vlgmr.msra.gmra.mxu1 %v2012_v51  ;;  %2797 = vmatmul.mubr.bf16.vlgmr.msra.gmra.mxu0 %v2012_v51  ;;  %v4169_v51 = vld [vmem:[%s4477_s5 + $0xc0] sm:$0xff]  }
 0x1e9   :  { %2724 = vmatpush1.bf16.msra.mxu1 %v4097_v63  ;;  %2755 = vmatprep.mubr.bf16.mxu1 %v4353_v24  ;;  %v4150_v24 = vld [vmem:[%s4477_s5 + $0x28] sm:$0xff]   ;;  %v4168_v63 = vld [vmem:[%s4477_s5 + $0x80] sm:$0xff]  }
 0x1ea   :  { %2725 = vmatprep.subr.bf16.mxu1 %v4102_v43  ;;  %3572 = vmatpush3.bf16.msra.mxu0 %v4146_v29  ;;  %v2112_v43 = vld [vmem:[%s4476_s4] sm:$0xf] }
 0x1eb   :  { %3573 = vmatprep.subr.bf16.mxu0 %v4147_v52  ;;  %v2117_v29 = vrot.slane %v2112_v43, %v322_v25  ;;  %v2121_v52 = vrot.slane %v2112_v43, %v326_v27  ;;  %v2125_v25 = vrot.slane %v2112_v43, %v330_v30  ;;  %v2129_v27 = vrot.slane %v2112_v43, %v334_v31  ;;  %v4171_v31 = vld [vmem:[%s4479_s7] sm:$0xff]  }
 0x1ec   :  { %v4222_v30 = vmov 0.0  }
 0x1ed   :  { %2726 = vmatpush1.bf16.msra.mxu1 %v4100_v46 }
 0x1ee   :  { %2727 = vmatprep.subr.bf16.mxu1 %v4105_v18  ;;  %3574 = vmatpush3.bf16.msra.mxu0 %v4148_v53 }
 0x1ef   :  { %3575 = vmatprep.subr.bf16.mxu0 %v4149_v54 }
 0x1f1   :  { %2728 = vmatpush1.bf16.msra.mxu1 %v4103_v56 }
 0x1f2   :  { %2729 = vmatprep.subr.bf16.mxu1 %v4108_v57  ;;  %3576 = vmatpush3.bf16.msra.mxu0 %v4150_v24 }
 0x1f3   :  { %3577 = vmatprep.subr.bf16.mxu0 %v4151_v58 }
 0x1f5   :  { %2730 = vmatpush1.bf16.msra.mxu1 %v4106_v59 }
 0x1f6   :  { %2731 = vmatprep.subr.bf16.mxu1 %v4111_v60  ;;  %3578 = vmatpush3.bf16.msra.mxu0 %v4152_v61 }
 0x1f7   :  { %3579 = vmatprep.subr.bf16.mxu0 %v4153_v0 }
 0x1f9   :  { %2732 = vmatpush1.bf16.msra.mxu1 %v4109_v1 }
 0x1fa   :  { %2733 = vmatprep.subr.bf16.mxu1 %v4114_v2  ;;  %3580 = vmatpush3.bf16.msra.mxu0 %v4154_v4 }
 0x1fb   :  { %3581 = vmatprep.subr.bf16.mxu0 %v4155_v5 }
 0x1fd   :  { %2734 = vmatpush1.bf16.msra.mxu1 %v4112_v6 }
 0x1fe   :  { %2735 = vmatprep.subr.bf16.mxu1 %v4117_v7  ;;  %3582 = vmatpush3.bf16.msra.mxu0 %v4156_v8 }
 0x1ff   :  { %3583 = vmatprep.subr.bf16.mxu0 %v4157_v39 }
 0x201   :  { %2736 = vmatpush1.bf16.msra.mxu1 %v4115_v9 }
 0x202   :  { %2737 = vmatprep.subr.bf16.mxu1 %v4120_v10  ;;  %3584 = vmatpush3.bf16.msra.mxu0 %v4158_v44 }
 0x203   :  { %3585 = vmatprep.subr.bf16.mxu0 %v4159_v62 }
 0x205   :  { %2738 = vmatpush1.bf16.msra.mxu1 %v4118_v11 }
 0x206   :  { %2739 = vmatprep.subr.bf16.mxu1 %v4123_v12 }
 0x209   :  { %2740 = vmatpush2.bf16.msra.mxu1 %v4121_v13 }
 0x20a   :  { %2741 = vmatprep.subr.bf16.mxu1 %v4126_v15 }
 0x20d   :  { %2742 = vmatpush2.bf16.msra.mxu1 %v4124_v16 }
 0x20e   :  { %2743 = vmatprep.subr.bf16.mxu1 %v4129_v17 }
 0x211   :  { %2744 = vmatpush2.bf16.msra.mxu1 %v4127_v20 }
 0x212   :  { %2745 = vmatprep.subr.bf16.mxu1 %v4132_v21 }
 0x215   :  { %2746 = vmatpush2.bf16.msra.mxu1 %v4130_v22 }
 0x216   :  { %2747 = vmatprep.subr.bf16.mxu1 %v4135_v23 }
 0x219   :  { %2748 = vmatpush2.bf16.msra.mxu1 %v4133_v28 }
 0x21a   :  { %2749 = vmatprep.subr.bf16.mxu1 %v4138_v32 }
 0x21d   :  { %2750 = vmatpush2.bf16.msra.mxu1 %v4136_v33  ;;  %v3540_v33 = vld [vmem:[%s4478_s6] ss:$0 sm:$0xff] }
 0x21e   :  { %2751 = vmatprep.subr.bf16.mxu1 %v4141_v34 }
 0x221   :  { %2752 = vmatpush2.bf16.msra.mxu1 %v4139_v35 }
 0x222   :  { %2753 = vmatprep.subr.bf16.mxu1 %v4144_v36 }
 0x225   :  { %2754 = vmatpush2.bf16.msra.mxu1 %v4142_v37 }
 0x226   :  { %3064 = vmatprep.subr.bf16.mxu1 %v4221_v19 }
 0x228   :  { %2756 = vmatmul.mubr.bf16.vlgmr.msra.gmra.mxu1 %v4355_v55  ;;  %v2675_v38 = vpop.f32.mrf.mxu0  ;;  %v4160_v55 = vld [vmem:[%s4477_s5] sm:$0xff]  }
 0x229   :  { %3586 = vmatpush3.bf16.msra.mxu0 %v4160_v55  ;;  %3065 = vmatpush1.bf16.msra.mxu1 %v4161_v3  ;;  %v2676_v46 = vadd.f32 %v2675_v38, %v2117_v29 }
 0x22a   :  { %v2677_v40 = vpop.f32.mrf.mxu0  ;;  %3066 = vmatprep.subr.bf16.mxu1 %v4221_v19  ;;  %3596 = vmatprep.subr.bf16.mxu0 %v4222_v30 }
 0x22b   :  { %v2678_v54 = vadd.f32 %v2677_v40, %v2121_v52 }
 0x22c   :  { %v2679_v47 = vpop.f32.mrf.mxu0 }
 0x22d   :  { %3067 = vmatpush1.bf16.msra.mxu1 %v4162_v48  ;;  %v3567_v47 = vld [vmem:[%s4480_s8] ss:$0 sm:$0xff] }
 0x22e   :  { %v2680_v14 = vpop.f32.mrf.mxu0  ;;  %3068 = vmatprep.subr.bf16.mxu1 %v4221_v19 }
 0x231   :  { %3069 = vmatpush1.bf16.msra.mxu1 %v4163_v49 }
 0x232   :  { %3070 = vmatprep.subr.bf16.mxu1 %v4221_v19 }
 0x235   :  { %3071 = vmatpush1.bf16.msra.mxu1 %v4164_v41 }
 0x236   :  { %3072 = vmatprep.subr.bf16.mxu1 %v4221_v19 }
 0x239   :  { %3073 = vmatpush1.bf16.msra.mxu1 %v4165_v45 }
 0x23a   :  { %3074 = vmatprep.subr.bf16.mxu1 %v4221_v19 }
 0x23d   :  { %3075 = vmatpush1.bf16.msra.mxu1 %v4166_v50 }
 0x23e   :  { %3076 = vmatprep.subr.bf16.mxu1 %v4221_v19 }
 0x241   :  { %3077 = vmatpush1.bf16.msra.mxu1 %v4167_v26 }
 0x242   :  { %3078 = vmatprep.subr.bf16.mxu1 %v4221_v19 }
 0x245   :  { %3079 = vmatpush1.bf16.msra.mxu1 %v4168_v63 }
 0x246   :  { %3094 = vmatprep.subr.bf16.mxu1 %v4221_v19 }
 0x249   :  { %3095 = vmatpush2.bf16.msra.mxu1 %v4169_v51 }
 0x2a8   :  { %v2716_v18 = vpop.f32.mrf.mxu1  ;;  %v2798_v53 = vpop.f32.mrf.mxu0 }
 0x2a9   :  { %v2717_v56 = vadd.f32 %v2716_v18, %v2676_v46 }
 0x2aa   :  { %v2718_v57 = vpop.f32.mrf.mxu1  ;;  %v2800_v24 = vpop.f32.mrf.mxu0 }
 0x2ab   :  { %v2719_v58 = vadd.f32 %v2718_v57, %v2678_v54  ;;  %v2805_v59 = vmax.f32 %v2717_v56, 0.0 }
 0x2ac   :  { %v2720_v60 = vpop.f32.mrf.mxu1  ;;  %v2802_v61 = vpop.f32.mrf.mxu0 }
 0x2ad   :  { %v2806_v0 = vmax.f32 %v2719_v58, 0.0  ;;  %v2809_v5 = vpack.c.bf16 %v2805_v59, %v2805_v59 }
 0x2ae   :  { %v2721_v1 = vpop.f32.mrf.mxu1  ;;  %v2803_v2 = vpop.f32.mrf.mxu0 }
 0x2af   :  { %v2810_v4 = vpack.c.bf16 %v2806_v0, %v2806_v0 }
 0x2b1   :  { %3056 = vmatprep.mubr.bf16.mxu0 %v2810_v4 }
 0x2b2   :  { %3057 = vmatmul.mubr.bf16.vlgmr.msra.gmra.mxu0 %v2809_v5 }
 0x2b3   :  { %3597 = vmatpush3.bf16.msra.mxu0 %v4170_v42  ;;  %3600 = vmatprep.mubr.msk.bf16.mxu0 %vm4223_vm3, %v4222_v30 }
 0x2b4   :  { %3598 = vmatprep.subr.bf16.mxu0 %v4222_v30 }
 0x2b7   :  { %3599 = vmatpush3.bf16.msra.mxu0 %v4171_v31 }
 0x2e8   :  { %v2757_v6 = vpop.f32.mrf.mxu1 }
 0x2e9   :  { %v2758_v7 = vadd.f32 %v2757_v6, %v2125_v25 }
 0x2ea   :  { %v2759_v8 = vpop.f32.mrf.mxu1 }
 0x2eb   :  { %v2799_v9 = vadd.f32 %v2798_v53, %v2758_v7  ;;  %v2760_v10 = vadd.f32 %v2759_v8, %v2129_v27 }
 0x2ec   :  { %v2761_v11 = vpop.f32.mrf.mxu1 }
 0x2ed   :  { %v2801_v12 = vadd.f32 %v2800_v24, %v2760_v10  ;;  %v2807_v13 = vmax.f32 %v2799_v9, 0.0 }
 0x2ee   :  { %v2762_v15 = vpop.f32.mrf.mxu1 }
 0x2ef   :  { %v2808_v16 = vmax.f32 %v2801_v12, 0.0  ;;  %v2811_v20 = vpack.c.bf16 %v2807_v13, %v2807_v13 }
 0x2f1   :  { %v2812_v17 = vpack.c.bf16 %v2808_v16, %v2808_v16 }
 0x2f3   :  { %3566 = vmatprep.mubr.msk.bf16.mxu1 %vm3020_vm2, %v2812_v17 }
 0x2f4   :  { %3097 = vmatmul.mubr.bf16.vlgmr.msra.gmra.mxu1 %v2811_v20 }
 0x372   :  { %v3587_v21 = vpop.f32.mrf.mxu0 }
 0x374   :  { %v3588_v22 = vpop.f32.mrf.mxu0 }
 0x375   :  { %v3589_v32 = vadd.f32 %v3588_v22, %v3587_v21 }
 0x376   :  { %v3590_v23 = vpop.f32.mrf.mxu0 }
 0x377   :  { %v3059_v34 = vadd.f32 %v3589_v32, %v3540_v33 }
 0x378   :  { %v3591_v28 = vpop.f32.mrf.mxu0 }
 0x3b4   :  { %v3098_v35 = vpop.f32.mrf.mxu1 }
 0x3b5   :  { %v3099_v36 = vadd.f32 %v3098_v35, %v3059_v34 }
 0x3b6   :  { %v3100_v37 = vpop.f32.mrf.mxu1 }
 0x3b7   :  { %v3104_v38 = vmax.f32 %v3099_v36, 0.0 }
 0x3b8   :  { %v3101_v39 = vpop.f32.mrf.mxu1 }
 0x3b9   :  { %v3105_v40 = vpack.c.bf16 %v3104_v38, %v3104_v38 }
 0x3ba   :  { %v3102_v44 = vpop.f32.mrf.mxu1 }
 0x3bb   :  { %3601 = vmatmul.mubr.msk.bf16.vlgmr.msra.gmra.mxu0 %vm3129_vm4, %v3105_v40 }
 0x47b   :  { %v3167_v62 = vpop.f32.mrf.mxu0 }
 0x47c   :  { %v3168_v14 = vadd.f32 %v3567_v47, %v3167_v62 }
 0x47d   :  { %v3602_v55 = vpop.f32.mrf.mxu0 }
 0x47e   :  { %3173 = vst [vmem:[%s4481_s9] sm:$0x3] %v3168_v14 }
 0x47f   :  { %v3170_v3 = vpop.f32.mrf.mxu0 }
 0x481   :  { %v3603_v19 = vpop.f32.mrf.mxu0 }
 0x482   :  { %3178 = vsyncpa [#allocation3], 1 }
 0x483   :  { %3179 = vsyncpa [#allocation5], 1 }

</bundles_post_ra>
